<compile_context>
chip_gen: v7x
topology: tpu7x:2x2x1
jax: 0.10.0
libtpu: 0.0.40
codegen_flags: <defaults>
</compile_context>

<pallas_src>
import jax
import jax.numpy as jnp
from jax.experimental import pallas as pl
from jax.experimental.pallas import tpu as pltpu


# ---------------------------------------------------------------------------
# Fused Pallas kernel: whole Critic_more forward in one invocation (6 matmuls)
# ---------------------------------------------------------------------------
def _critic_kernel(x_ref, pc_ref,
                   w1_ref, b1_ref,          # block-diag encoder layer 1  (22, 512)
                   w2_ref, b2_ref,          # block-diag encoder layer 2  (512, 512)
                   w3q_ref, bq_ref,         # encoder layer-3 ∘ score layer-1 fused (512, 256)
                   wpc_ref,                 # pc_feat rows of score layer-1 weight  (32, 256)
                   qw2_ref, qb2_ref,        # score layer 2 (256, 128)
                   qw3_ref, qb3_ref,        # score layer 3, lane-padded (128, 128)
                   o_ref):
    f32 = jnp.float32

    # All four encoders at once (block-diagonal weights).
    h1 = jnp.dot(x_ref[...], w1_ref[...], preferred_element_type=f32) + b1_ref[...]
    h1 = jnp.maximum(h1, 0.0)                                           # (B, 512)
    h2 = jnp.dot(h1, w2_ref[...], preferred_element_type=f32) + b2_ref[...]
    h2 = jnp.maximum(h2, 0.0)                                           # (B, 512)

    # Encoder layer-3 fused with score layer-1 (no ReLU between them in the
    # original module, so the composition is a single exact linear map).
    # The pc_feat contribution is a separate partial matmul -> concat-free.
    s1 = (jnp.dot(pc_ref[...], wpc_ref[...], preferred_element_type=f32)
          + jnp.dot(h2, w3q_ref[...], preferred_element_type=f32)
          + bq_ref[...])
    s1 = jnp.maximum(s1, 0.0)                                           # (B, 256)

    s2 = jnp.dot(s1, qw2_ref[...], preferred_element_type=f32) + qb2_ref[...]
    s2 = jnp.maximum(s2, 0.0)                                           # (B, 128)

    # Lane-dense (B, 128) store; the true score sits in column 0
    # (qw3/qb3 are the original (128,1)/(1,1) params zero-padded to 128 lanes).
    o_ref[...] = (jnp.dot(s2, qw3_ref[...], preferred_element_type=f32)
                  + qb3_ref[...]).astype(o_ref.dtype)


def critic_more_forward(kparams, pc_feat, state, action, hand_pos, root_pos):
    """Fused Critic_more forward.  Returns (B,) scores."""
    B = pc_feat.shape[0]
    # Tiny (B, 22) concat of the raw inputs feeds the block-diagonal layer-1
    # weight; cost is negligible compared to the kernel.
    x_cat = jnp.concatenate([state, action, hand_pos, root_pos], axis=-1)
    operands = (x_cat, pc_feat) + tuple(kparams)
    vmem = pl.BlockSpec(memory_space=pltpu.MemorySpace.VMEM)  # whole array in VMEM, no pipelining
    out = pl.pallas_call(
        _critic_kernel,
        out_shape=jax.ShapeDtypeStruct((B, 128), jnp.float32),
        in_specs=[vmem] * len(operands),
        out_specs=vmem,
    )(*operands)
    return out[:, 0]   # score lives in lane 0 of the lane-dense slab


# ---------------------------------------------------------------------------
# Parameter construction (deterministic, synthetic) + kernel-form packing
# ---------------------------------------------------------------------------
def _linear_params(key, in_dim, out_dim):
    kw, kb = jax.random.split(key)
    w = jax.random.normal(kw, (in_dim, out_dim), jnp.float32) * 0.05
    b = jax.random.normal(kb, (1, out_dim), jnp.float32) * 0.05
    return w, b


def _mlp3_params(key, dims):
    k1, k2, k3 = jax.random.split(key, 3)
    w1, b1 = _linear_params(k1, dims[0], dims[1])
    w2, b2 = _linear_params(k2, dims[1], dims[2])
    w3, b3 = _linear_params(k3, dims[2], dims[3])
    return (w1, b1, w2, b2, w3, b3)


def init_critic_more_params(key, pc_feat_dim, state_dim, state_feat_dim,
                            action_dim, action_feat_dim):
    """Raw per-layer parameters (mirror the PyTorch module)."""
    ks = jax.random.split(key, 5)
    score_in = pc_feat_dim + state_feat_dim + action_feat_dim + 128
    return {
        "state_encoder": _mlp3_params(ks[0], (state_dim, 128, 128, state_feat_dim)),
        "action_encoder": _mlp3_params(ks[1], (action_dim, 128, 128, action_feat_dim)),
        "hand_mlp": _mlp3_params(ks[2], (3, 128, 128, 64)),
        "root_mlp": _mlp3_params(ks[3], (3, 128, 128, 64)),
        "score": _mlp3_params(ks[4], (score_in, 256, 128, 1)),
    }


def _block_diag(*mats):
    rows = sum(m.shape[0] for m in mats)
    cols = sum(m.shape[1] for m in mats)
    out = jnp.zeros((rows, cols), jnp.float32)
    r = c = 0
    for m in mats:
        out = out.at[r:r + m.shape[0], c:c + m.shape[1]].set(m)
        r += m.shape[0]
        c += m.shape[1]
    return out


def prepare_kernel_params(raw, pc_feat_dim, state_feat_dim, action_feat_dim):
    """One-time exact repacking of the raw params into the fused kernel form."""
    sw1, sb1, sw2, sb2, sw3, sb3 = raw["state_encoder"]
    aw1, ab1, aw2, ab2, aw3, ab3 = raw["action_encoder"]
    hw1, hb1, hw2, hb2, hw3, hb3 = raw["hand_mlp"]
    rw1, rb1, rw2, rb2, rw3, rb3 = raw["root_mlp"]
    qw1, qb1, qw2, qb2, qw3, qb3 = raw["score"]

    # Split the score head's first-layer weight rows per concat source
    # (concat order in the module: [pc_feat, state_feat, action_feat, hand, root]).
    i0 = pc_feat_dim
    i1 = i0 + state_feat_dim
    i2 = i1 + action_feat_dim
    i3 = i2 + 64
    qw1_pc, qw1_s, qw1_a = qw1[:i0], qw1[i0:i1], qw1[i1:i2]
    qw1_h, qw1_r = qw1[i2:i3], qw1[i3:]

    # Block-diagonal packing of the four encoders' first two layers.
    w1_blk = _block_diag(sw1, aw1, hw1, rw1)                         # (22, 512)
    b1_cat = jnp.concatenate([sb1, ab1, hb1, rb1], axis=-1)          # (1, 512)
    w2_blk = _block_diag(sw2, aw2, hw2, rw2)                         # (512, 512)
    b2_cat = jnp.concatenate([sb2, ab2, hb2, rb2], axis=-1)          # (1, 512)

    # Encoder layer-3 composed with score layer-1 (both linear, no ReLU between):
    #   (h2_s @ sw3 + sb3) @ qw1_s  ==  h2_s @ (sw3 @ qw1_s) + sb3 @ qw1_s, etc.
    w3q = jnp.concatenate(
        [sw3 @ qw1_s, aw3 @ qw1_a, hw3 @ qw1_h, rw3 @ qw1_r], axis=0)  # (512, 256)
    b_fused = (qb1 + sb3 @ qw1_s + ab3 @ qw1_a
               + hb3 @ qw1_h + rb3 @ qw1_r)                            # (1, 256)

    # Zero-pad the final (128, 1) layer to 128 output lanes for a lane-dense store.
    qw3_pad = jnp.pad(qw3, ((0, 0), (0, 127)))                        # (128, 128)
    qb3_pad = jnp.pad(qb3, ((0, 0), (0, 127)))                        # (1, 128)

    return (w1_blk, b1_cat, w2_blk, b2_cat, w3q, b_fused,
            qw1_pc, qw2, qb2, qw3_pad, qb3_pad)


# ---------------------------------------------------------------------------
# Plain-JAX reference (mirrors the PyTorch module exactly, unfused params)
# ---------------------------------------------------------------------------
def _mlp3_ref(x, w1, b1, w2, b2, w3, b3):
    h = jnp.maximum(x @ w1 + b1, 0.0)
    h = jnp.maximum(h @ w2 + b2, 0.0)
    return h @ w3 + b3


def critic_more_ref(params, pc_feat, state, action, hand_pos, root_pos):
    sf = _mlp3_ref(state, *params["state_encoder"])
    af = _mlp3_ref(action, *params["action_encoder"])
    hf = _mlp3_ref(hand_pos, *params["hand_mlp"])
    rf = _mlp3_ref(root_pos, *params["root_mlp"])
    pos = jnp.concatenate([hf, rf], axis=-1)
    net = jnp.concatenate([pc_feat, sf, af, pos], axis=-1)
    return jnp.squeeze(_mlp3_ref(net, *params["score"]), axis=-1)


# ---------------------------------------------------------------------------
if __name__ == "__main__":
    # Small, module-consistent shapes.
    B = 8
    pc_feat_dim = 32
    state_dim = 10
    state_feat_dim = 32
    action_dim = 6
    action_feat_dim = 32

    key = jax.random.PRNGKey(0)
    kp, k1, k2, k3, k4, k5 = jax.random.split(key, 6)

    raw_params = init_critic_more_params(
        kp, pc_feat_dim, state_dim, state_feat_dim, action_dim, action_feat_dim)
    kparams = prepare_kernel_params(
        raw_params, pc_feat_dim, state_feat_dim, action_feat_dim)

    pc_feat = jax.random.normal(k1, (B, pc_feat_dim), jnp.float32)
    state = jax.random.normal(k2, (B, state_dim), jnp.float32)
    action = jax.random.normal(k3, (B, action_dim), jnp.float32)
    hand_pos = jax.random.normal(k4, (B, 3), jnp.float32)
    root_pos = jax.random.normal(k5, (B, 3), jnp.float32)

    fwd = jax.jit(critic_more_forward)
    out = fwd(kparams, pc_feat, state, action, hand_pos, root_pos)
    out = jax.block_until_ready(out)

    ref = critic_more_ref(raw_params, pc_feat, state, action, hand_pos, root_pos)
    assert out.shape == (B,)
    assert jnp.allclose(out, ref, atol=1e-4, rtol=1e-4), (
        f"max abs err = {jnp.max(jnp.abs(out - ref))}")

    print("KERNEL_OK")
</pallas_src>

<mosaic_0001>
module attributes {stable_mosaic.version = 11 : i64} {
  func.func @_critic_kernel(%arg0: memref<8x22xf32, #tpu.memory_space<vmem>>, %arg1: memref<8x32xf32, #tpu.memory_space<vmem>>, %arg2: memref<22x512xf32, #tpu.memory_space<vmem>>, %arg3: memref<1x512xf32, #tpu.memory_space<vmem>>, %arg4: memref<512x512xf32, #tpu.memory_space<vmem>>, %arg5: memref<1x512xf32, #tpu.memory_space<vmem>>, %arg6: memref<512x256xf32, #tpu.memory_space<vmem>>, %arg7: memref<1x256xf32, #tpu.memory_space<vmem>>, %arg8: memref<32x256xf32, #tpu.memory_space<vmem>>, %arg9: memref<256x128xf32, #tpu.memory_space<vmem>>, %arg10: memref<1x128xf32, #tpu.memory_space<vmem>>, %arg11: memref<128x128xf32, #tpu.memory_space<vmem>>, %arg12: memref<1x128xf32, #tpu.memory_space<vmem>>, %arg13: memref<8x128xf32, #tpu.memory_space<vmem>>) attributes {dimension_semantics = [], scalar_prefetch = 0 : i64, scratch_operands = 0 : i64, tpu.core_type = #tpu.core_type<tc>} {
    %c0 = arith.constant 0 : index
    %c0_0 = arith.constant 0 : index
    %0 = vector.load %arg0[%c0, %c0_0] : memref<8x22xf32, #tpu.memory_space<vmem>>, vector<8x22xf32>
    %c0_1 = arith.constant 0 : index
    %c0_2 = arith.constant 0 : index
    %1 = vector.load %arg2[%c0_1, %c0_2] : memref<22x512xf32, #tpu.memory_space<vmem>>, vector<22x512xf32>
    %cst = arith.constant dense<0.000000e+00> : vector<8x512xf32>
    %2 = tpu.matmul %0, %1, %cst {dimension_numbers = #tpu.dot_dimension_numbers<[1], [0], [0], [1], [0, 0, 1, 1], [], []>} : vector<8x22xf32>, vector<22x512xf32>, vector<8x512xf32> -> vector<8x512xf32>
    %c0_3 = arith.constant 0 : index
    %c0_4 = arith.constant 0 : index
    %3 = vector.load %arg3[%c0_3, %c0_4] : memref<1x512xf32, #tpu.memory_space<vmem>>, vector<1x512xf32>
    %4 = vector.broadcast %3 : vector<1x512xf32> to vector<8x512xf32>
    %5 = arith.addf %2, %4 : vector<8x512xf32>
    %cst_5 = arith.constant 0.000000e+00 : f32
    %6 = vector.broadcast %cst_5 : f32 to vector<8x512xf32>
    %7 = arith.maximumf %5, %6 : vector<8x512xf32>
    %c0_6 = arith.constant 0 : index
    %c0_7 = arith.constant 0 : index
    %8 = vector.load %arg4[%c0_6, %c0_7] : memref<512x512xf32, #tpu.memory_space<vmem>>, vector<512x512xf32>
    %cst_8 = arith.constant dense<0.000000e+00> : vector<8x512xf32>
    %9 = tpu.matmul %7, %8, %cst_8 {dimension_numbers = #tpu.dot_dimension_numbers<[1], [0], [0], [1], [0, 0, 1, 1], [], []>} : vector<8x512xf32>, vector<512x512xf32>, vector<8x512xf32> -> vector<8x512xf32>
    %c0_9 = arith.constant 0 : index
    %c0_10 = arith.constant 0 : index
    %10 = vector.load %arg5[%c0_9, %c0_10] : memref<1x512xf32, #tpu.memory_space<vmem>>, vector<1x512xf32>
    %11 = vector.broadcast %10 : vector<1x512xf32> to vector<8x512xf32>
    %12 = arith.addf %9, %11 : vector<8x512xf32>
    %cst_11 = arith.constant 0.000000e+00 : f32
    %13 = vector.broadcast %cst_11 : f32 to vector<8x512xf32>
    %14 = arith.maximumf %12, %13 : vector<8x512xf32>
    %c0_12 = arith.constant 0 : index
    %c0_13 = arith.constant 0 : index
    %15 = vector.load %arg1[%c0_12, %c0_13] : memref<8x32xf32, #tpu.memory_space<vmem>>, vector<8x32xf32>
    %c0_14 = arith.constant 0 : index
    %c0_15 = arith.constant 0 : index
    %16 = vector.load %arg8[%c0_14, %c0_15] : memref<32x256xf32, #tpu.memory_space<vmem>>, vector<32x256xf32>
    %cst_16 = arith.constant dense<0.000000e+00> : vector<8x256xf32>
    %17 = tpu.matmul %15, %16, %cst_16 {dimension_numbers = #tpu.dot_dimension_numbers<[1], [0], [0], [1], [0, 0, 1, 1], [], []>} : vector<8x32xf32>, vector<32x256xf32>, vector<8x256xf32> -> vector<8x256xf32>
    %c0_17 = arith.constant 0 : index
    %c0_18 = arith.constant 0 : index
    %18 = vector.load %arg6[%c0_17, %c0_18] : memref<512x256xf32, #tpu.memory_space<vmem>>, vector<512x256xf32>
    %cst_19 = arith.constant dense<0.000000e+00> : vector<8x256xf32>
    %19 = tpu.matmul %14, %18, %cst_19 {dimension_numbers = #tpu.dot_dimension_numbers<[1], [0], [0], [1], [0, 0, 1, 1], [], []>} : vector<8x512xf32>, vector<512x256xf32>, vector<8x256xf32> -> vector<8x256xf32>
    %20 = arith.addf %17, %19 : vector<8x256xf32>
    %c0_20 = arith.constant 0 : index
    %c0_21 = arith.constant 0 : index
    %21 = vector.load %arg7[%c0_20, %c0_21] : memref<1x256xf32, #tpu.memory_space<vmem>>, vector<1x256xf32>
    %22 = vector.broadcast %21 : vector<1x256xf32> to vector<8x256xf32>
    %23 = arith.addf %20, %22 : vector<8x256xf32>
    %cst_22 = arith.constant 0.000000e+00 : f32
    %24 = vector.broadcast %cst_22 : f32 to vector<8x256xf32>
    %25 = arith.maximumf %23, %24 : vector<8x256xf32>
    %c0_23 = arith.constant 0 : index
    %c0_24 = arith.constant 0 : index
    %26 = vector.load %arg9[%c0_23, %c0_24] : memref<256x128xf32, #tpu.memory_space<vmem>>, vector<256x128xf32>
    %cst_25 = arith.constant dense<0.000000e+00> : vector<8x128xf32>
    %27 = tpu.matmul %25, %26, %cst_25 {dimension_numbers = #tpu.dot_dimension_numbers<[1], [0], [0], [1], [0, 0, 1, 1], [], []>} : vector<8x256xf32>, vector<256x128xf32>, vector<8x128xf32> -> vector<8x128xf32>
    %c0_26 = arith.constant 0 : index
    %c0_27 = arith.constant 0 : index
    %28 = vector.load %arg10[%c0_26, %c0_27] : memref<1x128xf32, #tpu.memory_space<vmem>>, vector<1x128xf32>
    %29 = vector.broadcast %28 : vector<1x128xf32> to vector<8x128xf32>
    %30 = arith.addf %27, %29 : vector<8x128xf32>
    %cst_28 = arith.constant 0.000000e+00 : f32
    %31 = vector.broadcast %cst_28 : f32 to vector<8x128xf32>
    %32 = arith.maximumf %30, %31 : vector<8x128xf32>
    %c0_29 = arith.constant 0 : index
    %c0_30 = arith.constant 0 : index
    %33 = vector.load %arg11[%c0_29, %c0_30] : memref<128x128xf32, #tpu.memory_space<vmem>>, vector<128x128xf32>
    %cst_31 = arith.constant dense<0.000000e+00> : vector<8x128xf32>
    %34 = tpu.matmul %32, %33, %cst_31 {dimension_numbers = #tpu.dot_dimension_numbers<[1], [0], [0], [1], [0, 0, 1, 1], [], []>} : vector<8x128xf32>, vector<128x128xf32>, vector<8x128xf32> -> vector<8x128xf32>
    %c0_32 = arith.constant 0 : index
    %c0_33 = arith.constant 0 : index
    %35 = vector.load %arg12[%c0_32, %c0_33] : memref<1x128xf32, #tpu.memory_space<vmem>>, vector<1x128xf32>
    %36 = vector.broadcast %35 : vector<1x128xf32> to vector<8x128xf32>
    %37 = arith.addf %34, %36 : vector<8x128xf32>
    %c0_34 = arith.constant 0 : index
    %c0_35 = arith.constant 0 : index
    %38 = vector.load %arg13[%c0_34, %c0_35] : memref<8x128xf32, #tpu.memory_space<vmem>>, vector<8x128xf32>
    tpu.vector_store %arg13[%c0_34, %c0_35], %37 {strides = array<i32>} : memref<8x128xf32, #tpu.memory_space<vmem>>, vector<8x128xf32>,
    return
  }
}

</mosaic_0001>

<bundles_post_ra>
// kernel: critic_more_forward.1
= control target key start
LH: loop header
LB: loop body
LE: loop exit
PB: predicated region body
PF: predicated region fallthrough
CT: control target
= control target key end

     0   :  { %18 = vsyncpa [#allocation3], 0  ;;  %s2564_s0 = inlined_call_operand.vmem [shape: f32[8,22], index: 0, kind: input, shape index: {}]   ;;  %s2565_s1 = inlined_call_operand.vmem [shape: f32[8,32], index: 1, kind: input, shape index: {}]   ;;  %s2566_s2 = inlined_call_operand.hbm [shape: f32[22,512], index: 2, kind: input, shape index: {}]   ;;  %s2567_s3 = inlined_call_operand.hbm [shape: f32[1,512], index: 3, kind: input, shape index: {}]   ;;  %s2568_s4 = inlined_call_operand.hbm [shape: f32[512,512], index: 4, kind: input, shape index: {}]   ;;  %s2569_s5 = inlined_call_operand.hbm [shape: f32[1,512], index: 5, kind: input, shape index: {}]   ;;  %s2570_s6 = inlined_call_operand.hbm [shape: f32[512,256], index: 6, kind: input, shape index: {}]   ;;  %s2571_s7 = inlined_call_operand.vmem [shape: f32[1,256], index: 7, kind: input, shape index: {}]   ;;  %s2572_s8 = inlined_call_operand.vmem [shape: f32[32,256], index: 8, kind: input, shape index: {}]   ;;  %s2573_s9 = inlined_call_operand.hbm [shape: f32[256,128], index: 9, kind: input, shape index: {}]   ;;  %s2574_s10 = inlined_call_operand.hbm [shape: f32[1,128], index: 10, kind: input, shape index: {}]   ;;  %s2575_s11 = inlined_call_operand.hbm [shape: f32[128,128], index: 11, kind: input, shape index: {}]   ;;  %s2576_s12 = inlined_call_operand.vmem [shape: f32[1,128], index: 12, kind: input, shape index: {}]   ;;  %s2577_s13 = inlined_call_operand.vmem [shape: f32[8,128], index: 13, kind: output, shape index: {}]  }
   0x1   :  { %19 = vsyncpa [#allocation5], 0 }
   0x2   :  { %20 = vsyncpa [#allocation8], 0 }
   0x3   :  { %21 = vsyncpa [#allocation11], 0 }
   0x4   :  { %22 = vsyncpa [#allocation14], 0  ;;  %s2261_s25 = smov [#allocation4]   ;;  %s2262_s27 = smov [#allocation7]  }
   0x5   :  { %s45_s26 = sshll.u32 %s2261_s25, 4  ;;  %s67_s28 = sshll.u32 %s2262_s27, 4  ;;  %s46_s26 = int_to_ptr.vmem [resolvable:$true] %s45_s26  ;;  %s68_s28 = int_to_ptr.vmem [resolvable:$true] %s67_s28 }
   0x6   :  { %s2075_s14 = scalar_lea.hbm %s2567_s3, 64 }
   0x7   :  { %p2076_p0 = scmp.ne.s32.totalorder %s2567_s3, %s2075_s14  ;;  %p2079_p1 = scmp.lt.u32.totalorder %s2075_s14, %s2567_s3 }
   0x9   :  { %p2081_p2 = pnand %p2079_p1, %p2076_p0 }
   0xb   :  { %2084 = shalt.err (!%p2081_p2)
}
   0xc   :  { %s2085_s19 = scalar_lea.vmem %s46_s26, 64  ;;  %p2090_p4 = scmp.lt.s32.totalorder %s46_s26, %s46_s26 }
   0xd   :  { %p2086_p3 = scmp.ne.s32.totalorder %s46_s26, %s2085_s19  ;;  %p2091_p5 = scmp.lt.s32.totalorder %s2085_s19, %s2085_s19 }
   0xf   :  { %p2092_p6 = por %p2091_p5, %p2090_p4 }
  0x11   :  { %p2093_p7 = pnand %p2092_p6, %p2086_p3 }
  0x13   :  { %2096 = shalt.err (!%p2093_p7)
}
  0x14   :  { %48 = dma.hbm_to_vmem [thread:$0]  %s2567_s3, 64, %s46_s26, [#allocation5]  }
  0x15   :  { %s2097_s24 = scalar_lea.hbm %s2569_s5, 64 }
  0x16   :  { %p2098_p8 = scmp.ne.s32.totalorder %s2569_s5, %s2097_s24  ;;  %p2101_p9 = scmp.lt.u32.totalorder %s2097_s24, %s2569_s5 }
  0x18   :  { %p2103_p10 = pnand %p2101_p9, %p2098_p8 }
  0x1a   :  { %2106 = shalt.err (!%p2103_p10)
}
  0x1b   :  { %s2107_s14 = scalar_lea.vmem %s68_s28, 64  ;;  %p2112_p12 = scmp.lt.s32.totalorder %s68_s28, %s68_s28 }
  0x1c   :  { %p2108_p11 = scmp.ne.s32.totalorder %s68_s28, %s2107_s14  ;;  %p2113_p13 = scmp.lt.s32.totalorder %s2107_s14, %s2107_s14 }
  0x1e   :  { %p2114_p0 = por %p2113_p13, %p2112_p12 }
  0x20   :  { %p2115_p1 = pnand %p2114_p0, %p2108_p11 }
  0x22   :  { %2118 = shalt.err (!%p2115_p1)
}
  0x23   :  { %70 = dma.hbm_to_vmem [thread:$0]  %s2569_s5, 64, %s68_s28, [#allocation8]  }
  0x24   :  { %s2263_s15 = smov [#allocation10]   ;;  %s2119_s19 = scalar_lea.hbm %s2573_s9, 4096 }
  0x25   :  { %s92_s16 = sshll.u32 %s2263_s15, 4  ;;  %p2120_p2 = scmp.ne.s32.totalorder %s2573_s9, %s2119_s19  ;;  %s93_s16 = int_to_ptr.vmem [resolvable:$true] %s92_s16 }
  0x26   :  { %p2123_p3 = scmp.lt.u32.totalorder %s2119_s19, %s2573_s9 }
  0x28   :  { %p2125_p4 = pnand %p2123_p3, %p2120_p2 }
  0x2a   :  { %2128 = shalt.err (!%p2125_p4)
}
  0x2b   :  { %s2129_s24 = scalar_lea.vmem %s93_s16, 4096  ;;  %p2134_p6 = scmp.lt.s32.totalorder %s93_s16, %s93_s16 }
  0x2c   :  { %p2130_p5 = scmp.ne.s32.totalorder %s93_s16, %s2129_s24  ;;  %p2135_p7 = scmp.lt.s32.totalorder %s2129_s24, %s2129_s24 }
  0x2e   :  { %p2136_p8 = por %p2135_p7, %p2134_p6 }
  0x30   :  { %p2137_p9 = pnand %p2136_p8, %p2130_p5 }
  0x32   :  { %2140 = shalt.err (!%p2137_p9)
}
  0x33   :  { %s2264_s5 = smov 128   ;;  %s2265_s28 = smov 8  }
  0x34   :  { %98 = dma.hbm_to_vmem [thread:$0]  %s2573_s9, 4096, %s93_s16, [#allocation11], %s2264_s5, %s2264_s5, %s2265_s28  }
  0x35   :  { %s2266_s29 = smov [#allocation2]   ;;  %s2141_s26 = scalar_lea.hbm %s2566_s2, 1536 }
  0x36   :  { %s32_s30 = sshll.u32 %s2266_s29, 4  ;;  %p2142_p10 = scmp.ne.s32.totalorder %s2566_s2, %s2141_s26  ;;  %s33_s30 = int_to_ptr.vmem [resolvable:$true] %s32_s30 }
  0x37   :  { %p2145_p11 = scmp.lt.u32.totalorder %s2141_s26, %s2566_s2 }
  0x39   :  { %p2147_p12 = pnand %p2145_p11, %p2142_p10 }
  0x3b   :  { %2150 = shalt.err (!%p2147_p12)
}
  0x3c   :  { %s2151_s20 = scalar_lea.vmem %s33_s30, 1536  ;;  %p2156_p0 = scmp.lt.s32.totalorder %s33_s30, %s33_s30 }
  0x3d   :  { %p2152_p13 = scmp.ne.s32.totalorder %s33_s30, %s2151_s20  ;;  %p2157_p1 = scmp.lt.s32.totalorder %s2151_s20, %s2151_s20 }
  0x3f   :  { %p2158_p2 = por %p2157_p1, %p2156_p0 }
  0x41   :  { %p2159_p3 = pnand %p2158_p2, %p2152_p13 }
  0x43   :  { %2162 = shalt.err (!%p2159_p3)
}
  0x44   :  { %s2267_s9 = smov 512   ;;  %s2268_s16 = smov 32  }
  0x45   :  { %38 = dma.hbm_to_vmem [thread:$0]  %s2566_s2, 1536, %s33_s30, [#allocation3], %s2267_s9, %s2267_s9, %s2268_s16  }
  0x46   :  { %s2269_s23 = smov [#allocation6]   ;;  %s2270_s25 = smov [#allocation9]  }
  0x47   :  { %s54_s24 = sshll.u32 %s2269_s23, 4  ;;  %s76_s27 = sshll.u32 %s2270_s25, 4  ;;  %s55_s24 = int_to_ptr.vmem [resolvable:$true] %s54_s24  ;;  %s2399_s27 = int_to_ptr.vmem [resolvable:$true] %s76_s27 }
  0x48   :  { %s2163_s3 = scalar_lea.hbm %s2568_s4, 32768 }
  0x49   :  { %p2164_p4 = scmp.ne.s32.totalorder %s2568_s4, %s2163_s3  ;;  %p2167_p5 = scmp.lt.u32.totalorder %s2163_s3, %s2568_s4 }
  0x4b   :  { %p2169_p6 = pnand %p2167_p5, %p2164_p4 }
  0x4d   :  { %2172 = shalt.err (!%p2169_p6)
}
  0x4e   :  { %s2173_s2 = scalar_lea.vmem %s55_s24, 32768  ;;  %p2178_p8 = scmp.lt.s32.totalorder %s55_s24, %s55_s24 }
  0x4f   :  { %p2174_p7 = scmp.ne.s32.totalorder %s55_s24, %s2173_s2  ;;  %p2179_p9 = scmp.lt.s32.totalorder %s2173_s2, %s2173_s2 }
  0x51   :  { %p2180_p10 = por %p2179_p9, %p2178_p8 }
  0x53   :  { %p2181_p11 = pnand %p2180_p10, %p2174_p7 }
  0x55   :  { %2184 = shalt.err (!%p2181_p11)
}
  0x56   :  { %60 = dma.hbm_to_vmem [thread:$0]  %s2568_s4, 32768, %s55_s24, [#allocation5], %s2267_s9, %s2267_s9, %s2268_s16  }
  0x57   :  { %s2185_s22 = scalar_lea.hbm %s2570_s6, 16384 }
  0x58   :  { %p2186_p12 = scmp.ne.s32.totalorder %s2570_s6, %s2185_s22  ;;  %p2189_p13 = scmp.lt.u32.totalorder %s2185_s22, %s2570_s6 }
  0x5a   :  { %p2191_p0 = pnand %p2189_p13, %p2186_p12 }
  0x5c   :  { %2194 = shalt.err (!%p2191_p0)
}
  0x5d   :  { %s2195_s3 = scalar_lea.vmem %s2399_s27, 16384  ;;  %p2200_p2 = scmp.lt.s32.totalorder %s2399_s27, %s2399_s27 }
  0x5e   :  { %p2196_p1 = scmp.ne.s32.totalorder %s2399_s27, %s2195_s3  ;;  %p2201_p3 = scmp.lt.s32.totalorder %s2195_s3, %s2195_s3 }
  0x60   :  { %p2202_p4 = por %p2201_p3, %p2200_p2 }
  0x62   :  { %p2203_p5 = pnand %p2202_p4, %p2196_p1 }
  0x64   :  { %2206 = shalt.err (!%p2203_p5)
}
  0x65   :  { %s2271_s4 = smov 256   ;;  %s2272_s9 = smov 16  }
  0x66   :  { %82 = dma.hbm_to_vmem [thread:$0]  %s2570_s6, 16384, %s2399_s27, [#allocation8], %s2271_s4, %s2271_s4, %s2272_s9  }
  0x67   :  { %s2273_s26 = smov [#allocation12]   ;;  %s2274_s17 = smov [#allocation13]  }
  0x68   :  { %s105_s15 = sshll.u32 %s2273_s26, 4  ;;  %s114_s18 = sshll.u32 %s2274_s17, 4  ;;  %s106_s15 = int_to_ptr.vmem [resolvable:$true] %s105_s15  ;;  %s2430_s18 = int_to_ptr.vmem [resolvable:$true] %s114_s18 }
  0x69   :  { %s2207_s19 = scalar_lea.hbm %s2574_s10, 16 }
  0x6a   :  { %p2208_p6 = scmp.ne.s32.totalorder %s2574_s10, %s2207_s19  ;;  %p2211_p7 = scmp.lt.u32.totalorder %s2207_s19, %s2574_s10 }
  0x6c   :  { %p2213_p8 = pnand %p2211_p7, %p2208_p6 }
  0x6e   :  { %2216 = shalt.err (!%p2213_p8)
}
  0x6f   :  { %s2217_s6 = scalar_lea.vmem %s106_s15, 16  ;;  %s2221_s27 = scalar_lea.vmem %s106_s15, 32 }
  0x70   :  { %p2218_p9 = scmp.ne.s32.totalorder %s106_s15, %s2217_s6  ;;  %p2222_p10 = scmp.lt.s32.totalorder %s106_s15, %s106_s15 }
  0x71   :  { %p2223_p11 = scmp.lt.s32.totalorder %s2221_s27, %s2217_s6 }
  0x73   :  { %p2224_p12 = por %p2223_p11, %p2222_p10 }
  0x75   :  { %p2225_p13 = pnand %p2224_p12, %p2218_p9 }
  0x77   :  { %2228 = shalt.err (!%p2225_p13)
}
  0x78   :  { %108 = dma.hbm_to_vmem [thread:$0]  %s2574_s10, 16, %s106_s15, [#allocation11]  }
  0x79   :  { %s2229_s4 = scalar_lea.hbm %s2575_s11, 2048 }
  0x7a   :  { %p2230_p0 = scmp.ne.s32.totalorder %s2575_s11, %s2229_s4  ;;  %p2233_p1 = scmp.lt.u32.totalorder %s2229_s4, %s2575_s11 }
  0x7c   :  { %p2235_p2 = pnand %p2233_p1, %p2230_p0 }
  0x7e   :  { %2238 = shalt.err (!%p2235_p2)
}
  0x7f   :  { %s2239_s17 = scalar_lea.vmem %s2430_s18, 2048  ;;  %p2244_p4 = scmp.lt.s32.totalorder %s2430_s18, %s2430_s18 }
  0x80   :  { %p2240_p3 = scmp.ne.s32.totalorder %s2430_s18, %s2239_s17  ;;  %p2245_p5 = scmp.lt.s32.totalorder %s2239_s17, %s2239_s17 }
  0x82   :  { %p2246_p6 = por %p2245_p5, %p2244_p4 }
  0x84   :  { %p2247_p7 = pnand %p2246_p6, %p2240_p3 }
  0x86   :  { %2250 = shalt.err (!%p2247_p7)
}
  0x87   :  { %120 = dma.hbm_to_vmem [thread:$0]  %s2575_s11, 2048, %s2430_s18, [#allocation14], %s2264_s5, %s2264_s5, %s2265_s28  }
  0x88   :  { %2251 = dma.done.wait [#allocation3], 1536  }
  0x89   :  { %2252 = vsyncadd [#allocation3], 4294965760 }
  0x8a   :  { %2253 = dma.done.wait [#allocation5], 32832  }
  0x8b   :  { %2254 = vsyncadd [#allocation5], 4294934464 }
  0x8c   :  { %2255 = dma.done.wait [#allocation8], 16448  }
  0x8d   :  { %2256 = vsyncadd [#allocation8], 4294950848 }
  0x8e   :  { %2257 = dma.done.wait [#allocation11], 4112  }
  0x8f   :  { %2258 = vsyncadd [#allocation11], 4294963184 }
  0x90   :  { %2259 = dma.done.wait [#allocation14], 2048  }
  0x91   :  { %2260 = vsyncadd [#allocation14], 4294965248  ;;  %v2275_v0 = vmov 0.0   ;;  %v149_v1 = vld [vmem:[#allocation2 + $0x8] sm:$0xff]  ;;  %v148_v3 = vld [vmem:[#allocation2] sm:$0xff]  ;;  %vm186_vm0 = vcmask 1045504  }
  0x92   :  { %263 = vmatprep.mubr.f32.mxu1 %v2275_v0  ;;  %v153_v2 = vld [vmem:[#allocation2 + $0x28] sm:$0xff]  ;;  %v152_v5 = vld [vmem:[#allocation2 + $0x20] sm:$0xff]  ;;  %v151_v8 = vld [vmem:[#allocation2 + $0x18] sm:$0xff]  ;;  %vm182_vm1 = vcmask 179200   ;;  %vm1190_vm2 = vcmask 261120   ;;  %vm2277_vm3 = vmmov 0  }
  0x93   :  { %v1590_v4 = vpack.c.bf16 %v153_v2, %v149_v1  ;;  %v1592_v6 = vpack.c.bf16 %v152_v5, %v148_v3  ;;  %v157_v7 = vld [vmem:[#allocation2 + $0x48] sm:$0x3f]  ;;  %v155_v9 = vld [vmem:[#allocation2 + $0x38] sm:$0xff]  ;;  %v150_v10 = vld [vmem:[#allocation2 + $0x10] sm:$0xff] }
  0x94   :  { %v154_v11 = vld [vmem:[#allocation2 + $0x30] sm:$0xff]  ;;  %v156_v12 = vld [vmem:[#allocation2 + $0x40] sm:$0x3f]  ;;  %v1594_v13 = vpack.c.bf16 %v155_v9, %v151_v8  ;;  %v159_v16 = vld [vmem:[#allocation2 + $0x58] sm:$0x3f] }
  0x95   :  { %1591 = vmatprep.subr.bf16.mxu1 %v1590_v4  ;;  %v147_v14 = vld [vmem:[%s2564_s0] sm:$0xff]  ;;  %v1596_v15 = vpack.c.bf16 %v154_v11, %v150_v10  ;;  %v346_v17 = vld [vmem:[#allocation6 + $0x8] sm:$0xff] }
  0x96   :  { %1593 = vmatpush1.bf16.msra.mxu1 %v1592_v6  ;;  %v474_v18 = vld [vmem:[#allocation6 + $0x408] sm:$0xff]  ;;  %v473_v22 = vld [vmem:[#allocation6 + $0x400] sm:$0xff] }
  0x97   :  { %1494 = vmatprep.subr.msk.mxu1 %vm186_vm0, %v157_v7  ;;  %v478_v19 = vld [vmem:[#allocation6 + $0x428] sm:$0xff]  ;;  %v477_v23 = vld [vmem:[#allocation6 + $0x420] sm:$0xff] }
  0x98   :  { %v350_v20 = vld [vmem:[#allocation6 + $0x28] sm:$0xff]  ;;  %v1662_v21 = vpack.c.bf16 %v478_v19, %v474_v18  ;;  %v345_v24 = vld [vmem:[#allocation6] sm:$0xff]  ;;  %v1664_v26 = vpack.c.bf16 %v477_v23, %v473_v22 }
  0x99   :  { %v349_v25 = vld [vmem:[#allocation6 + $0x20] sm:$0xff]  ;;  %v482_v27 = vld [vmem:[#allocation6 + $0x448] sm:$0xff]  ;;  %v1598_v32 = vpack.c.bf16 %v350_v20, %v346_v17 }
  0x9a   :  { %1495 = vmatpush1.msk.msra.mxu1 %vm186_vm0, %v156_v12  ;;  %v354_v28 = vld [vmem:[#allocation6 + $0x48] sm:$0xff]  ;;  %1663 = vmatprep.subr.bf16.mxu0 %v1662_v21  ;;  %v481_v34 = vld [vmem:[#allocation6 + $0x440] sm:$0xff]  ;;  %v1600_v36 = vpack.c.bf16 %v349_v25, %v345_v24 }
  0x9b   :  { %1496 = vmatmul.mubr.msk.f32.vlgmr.msra.gmra.mrb[0].mxu1 %vm182_vm1, %v147_v14  ;;  %1595 = vmatprep.subr.bf16.mxu1 %v1594_v13  ;;  %v358_v29 = vld [vmem:[#allocation6 + $0x68] sm:$0xff]  ;;  %v485_v35 = vld [vmem:[#allocation6 + $0x460] sm:$0xff] }
  0x9c   :  { %1597 = vmatpush1.bf16.msra.mxu1 %v1596_v15  ;;  %334 = vmatprep.mubr.f32.mxu1 %v2275_v0  ;;  %v486_v30 = vld [vmem:[#allocation6 + $0x468] sm:$0xff]  ;;  %v1668_v37 = vpack.c.bf16 %v485_v35, %v481_v34  ;;  %v1602_v40 = vpack.c.bf16 %v358_v29, %v354_v28  ;;  %v353_v41 = vld [vmem:[#allocation6 + $0x40] sm:$0xff] }
  0x9d   :  { %1497 = vmatprep.subr.msk.mxu1 %vm186_vm0, %v159_v16  ;;  %v158_v31 = vld [vmem:[#allocation2 + $0x50] sm:$0x3f]  ;;  %v1666_v33 = vpack.c.bf16 %v486_v30, %v482_v27  ;;  %1665 = vmatpush1.bf16.msra.mxu0 %v1664_v26  ;;  %v357_v42 = vld [vmem:[#allocation6 + $0x60] sm:$0xff] }
  0x9e   :  { %v490_v38 = vld [vmem:[#allocation6 + $0x488] sm:$0xff]  ;;  %v489_v44 = vld [vmem:[#allocation6 + $0x480] sm:$0xff]  ;;  %v1604_v50 = vpack.c.bf16 %v357_v42, %v353_v41 }
  0x9f   :  { %v494_v39 = vld [vmem:[#allocation6 + $0x4a8] sm:$0xff]  ;;  %1667 = vmatprep.subr.bf16.mxu0 %v1666_v33  ;;  %v493_v47 = vld [vmem:[#allocation6 + $0x4a0] sm:$0xff] }
  0xa0   :  { %v1670_v43 = vpack.c.bf16 %v494_v39, %v490_v38  ;;  %1498 = vmatpush1.msk.msra.mxu1 %vm186_vm0, %v158_v31  ;;  %v362_v45 = vld [vmem:[#allocation6 + $0x88] sm:$0xff]  ;;  %v361_v51 = vld [vmem:[#allocation6 + $0x80] sm:$0xff]  ;;  %v1672_v53 = vpack.c.bf16 %v493_v47, %v489_v44 }
  0xa1   :  { %v366_v46 = vld [vmem:[#allocation6 + $0xa8] sm:$0xff]  ;;  %1499 = vmatmul.mubr.msk.f32.vlgmr.msra.gmra.mrb[2].mxu1 %vm182_vm1, %v147_v14  ;;  %1599 = vmatprep.subr.bf16.mxu1 %v1598_v32  ;;  %v365_v52 = vld [vmem:[#allocation6 + $0xa0] sm:$0xff] }
  0xa2   :  { %v498_v48 = vld [vmem:[#allocation6 + $0x4c8] sm:$0xff]  ;;  %1601 = vmatpush1.bf16.msra.mxu1 %v1600_v36  ;;  %1669 = vmatpush1.bf16.msra.mxu0 %v1668_v37  ;;  %v1606_v54 = vpack.c.bf16 %v366_v46, %v362_v45  ;;  %v497_v57 = vld [vmem:[#allocation6 + $0x4c0] sm:$0xff]  ;;  %v1608_v62 = vpack.c.bf16 %v365_v52, %v361_v51 }
  0xa3   :  { %v502_v49 = vld [vmem:[#allocation6 + $0x4e8] sm:$0xff]  ;;  %1603 = vmatprep.subr.bf16.mxu1 %v1602_v40  ;;  %1671 = vmatprep.subr.bf16.mxu0 %v1670_v43  ;;  %v501_v58 = vld [vmem:[#allocation6 + $0x4e0] sm:$0xff] }
  0xa4   :  { %v370_v55 = vld [vmem:[#allocation6 + $0xc8] sm:$0xff]  ;;  %v1674_v56 = vpack.c.bf16 %v502_v49, %v498_v48  ;;  %v369_v63 = vld [vmem:[#allocation6 + $0xc0] sm:$0xff]  ;;  %v1676_v2 = vpack.c.bf16 %v501_v58, %v497_v57 }
  0xa5   :  { %v374_v59 = vld [vmem:[#allocation6 + $0xe8] sm:$0xff]  ;;  %v373_v1 = vld [vmem:[#allocation6 + $0xe0] sm:$0xff] }
  0xa6   :  { %v506_v60 = vld [vmem:[#allocation6 + $0x508] sm:$0xff]  ;;  %1605 = vmatpush1.bf16.msra.mxu1 %v1604_v50  ;;  %1673 = vmatpush1.bf16.msra.mxu0 %v1672_v53  ;;  %v1610_v3 = vpack.c.bf16 %v374_v59, %v370_v55  ;;  %v505_v6 = vld [vmem:[#allocation6 + $0x500] sm:$0xff]  ;;  %v1612_v11 = vpack.c.bf16 %v373_v1, %v369_v63 }
  0xa7   :  { %v510_v61 = vld [vmem:[#allocation6 + $0x528] sm:$0xff]  ;;  %1607 = vmatprep.subr.bf16.mxu1 %v1606_v54  ;;  %1675 = vmatprep.subr.bf16.mxu0 %v1674_v56  ;;  %v509_v7 = vld [vmem:[#allocation6 + $0x520] sm:$0xff] }
  0xa8   :  { %v378_v4 = vld [vmem:[#allocation6 + $0x108] sm:$0xff]  ;;  %v1678_v5 = vpack.c.bf16 %v510_v61, %v506_v60  ;;  %v377_v12 = vld [vmem:[#allocation6 + $0x100] sm:$0xff]  ;;  %v1680_v14 = vpack.c.bf16 %v509_v7, %v505_v6 }
  0xa9   :  { %v382_v8 = vld [vmem:[#allocation6 + $0x128] sm:$0xff]  ;;  %v381_v13 = vld [vmem:[#allocation6 + $0x120] sm:$0xff] }
  0xaa   :  { %v514_v9 = vld [vmem:[#allocation6 + $0x548] sm:$0xff]  ;;  %1609 = vmatpush1.bf16.msra.mxu1 %v1608_v62  ;;  %1677 = vmatpush1.bf16.msra.mxu0 %v1676_v2  ;;  %v1614_v15 = vpack.c.bf16 %v382_v8, %v378_v4  ;;  %v513_v18 = vld [vmem:[#allocation6 + $0x540] sm:$0xff]  ;;  %v1616_v23 = vpack.c.bf16 %v381_v13, %v377_v12 }
  0xab   :  { %v518_v10 = vld [vmem:[#allocation6 + $0x568] sm:$0xff]  ;;  %1611 = vmatprep.subr.bf16.mxu1 %v1610_v3  ;;  %1679 = vmatprep.subr.bf16.mxu0 %v1678_v5  ;;  %v517_v19 = vld [vmem:[#allocation6 + $0x560] sm:$0xff] }
  0xac   :  { %v386_v16 = vld [vmem:[#allocation6 + $0x148] sm:$0xff]  ;;  %v1682_v17 = vpack.c.bf16 %v518_v10, %v514_v9  ;;  %v385_v24 = vld [vmem:[#allocation6 + $0x140] sm:$0xff]  ;;  %v1684_v26 = vpack.c.bf16 %v517_v19, %v513_v18 }
  0xad   :  { %v390_v20 = vld [vmem:[#allocation6 + $0x168] sm:$0xff]  ;;  %v389_v25 = vld [vmem:[#allocation6 + $0x160] sm:$0xff] }
  0xae   :  { %v522_v21 = vld [vmem:[#allocation6 + $0x588] sm:$0xff]  ;;  %1613 = vmatpush1.bf16.msra.mxu1 %v1612_v11  ;;  %1681 = vmatpush1.bf16.msra.mxu0 %v1680_v14  ;;  %v1618_v27 = vpack.c.bf16 %v390_v20, %v386_v16  ;;  %v521_v30 = vld [vmem:[#allocation6 + $0x580] sm:$0xff]  ;;  %v1620_v35 = vpack.c.bf16 %v389_v25, %v385_v24 }
  0xaf   :  { %v526_v22 = vld [vmem:[#allocation6 + $0x5a8] sm:$0xff]  ;;  %1615 = vmatprep.subr.bf16.mxu1 %v1614_v15  ;;  %1683 = vmatprep.subr.bf16.mxu0 %v1682_v17  ;;  %v525_v31 = vld [vmem:[#allocation6 + $0x5a0] sm:$0xff] }
  0xb0   :  { %v394_v28 = vld [vmem:[#allocation6 + $0x188] sm:$0xff]  ;;  %v1686_v29 = vpack.c.bf16 %v526_v22, %v522_v21  ;;  %v393_v36 = vld [vmem:[#allocation6 + $0x180] sm:$0xff]  ;;  %v1688_v38 = vpack.c.bf16 %v525_v31, %v521_v30 }
  0xb1   :  { %v398_v32 = vld [vmem:[#allocation6 + $0x1a8] sm:$0xff]  ;;  %v397_v37 = vld [vmem:[#allocation6 + $0x1a0] sm:$0xff] }
  0xb2   :  { %v530_v33 = vld [vmem:[#allocation6 + $0x5c8] sm:$0xff]  ;;  %1617 = vmatpush1.bf16.msra.mxu1 %v1616_v23  ;;  %1685 = vmatpush1.bf16.msra.mxu0 %v1684_v26  ;;  %v1622_v39 = vpack.c.bf16 %v398_v32, %v394_v28  ;;  %v529_v42 = vld [vmem:[#allocation6 + $0x5c0] sm:$0xff]  ;;  %v1624_v47 = vpack.c.bf16 %v397_v37, %v393_v36 }
  0xb3   :  { %v534_v34 = vld [vmem:[#allocation6 + $0x5e8] sm:$0xff]  ;;  %1619 = vmatprep.subr.bf16.mxu1 %v1618_v27  ;;  %1687 = vmatprep.subr.bf16.mxu0 %v1686_v29  ;;  %v533_v43 = vld [vmem:[#allocation6 + $0x5e0] sm:$0xff] }
  0xb4   :  { %v402_v40 = vld [vmem:[#allocation6 + $0x1c8] sm:$0xff]  ;;  %v1690_v41 = vpack.c.bf16 %v534_v34, %v530_v33  ;;  %v401_v48 = vld [vmem:[#allocation6 + $0x1c0] sm:$0xff]  ;;  %v1692_v50 = vpack.c.bf16 %v533_v43, %v529_v42 }
  0xb5   :  { %v406_v44 = vld [vmem:[#allocation6 + $0x1e8] sm:$0xff]  ;;  %v405_v49 = vld [vmem:[#allocation6 + $0x1e0] sm:$0xff] }
  0xb6   :  { %v538_v45 = vld [vmem:[#allocation6 + $0x608] sm:$0xff]  ;;  %1621 = vmatpush1.bf16.msra.mxu1 %v1620_v35  ;;  %1689 = vmatpush1.bf16.msra.mxu0 %v1688_v38  ;;  %v1626_v51 = vpack.c.bf16 %v406_v44, %v402_v40  ;;  %v537_v54 = vld [vmem:[#allocation6 + $0x600] sm:$0xff]  ;;  %v1628_v59 = vpack.c.bf16 %v405_v49, %v401_v48 }
  0xb7   :  { %v542_v46 = vld [vmem:[#allocation6 + $0x628] sm:$0xff]  ;;  %1623 = vmatprep.subr.bf16.mxu1 %v1622_v39  ;;  %1691 = vmatprep.subr.bf16.mxu0 %v1690_v41  ;;  %v541_v55 = vld [vmem:[#allocation6 + $0x620] sm:$0xff] }
  0xb8   :  { %v410_v52 = vld [vmem:[#allocation6 + $0x208] sm:$0xff]  ;;  %v1694_v53 = vpack.c.bf16 %v542_v46, %v538_v45  ;;  %v409_v60 = vld [vmem:[#allocation6 + $0x200] sm:$0xff]  ;;  %v1696_v62 = vpack.c.bf16 %v541_v55, %v537_v54 }
  0xb9   :  { %v414_v56 = vld [vmem:[#allocation6 + $0x228] sm:$0xff]  ;;  %v413_v61 = vld [vmem:[#allocation6 + $0x220] sm:$0xff] }
  0xba   :  { %v546_v57 = vld [vmem:[#allocation6 + $0x648] sm:$0xff]  ;;  %1625 = vmatpush1.bf16.msra.mxu1 %v1624_v47  ;;  %1693 = vmatpush1.bf16.msra.mxu0 %v1692_v50  ;;  %v1630_v63 = vpack.c.bf16 %v414_v56, %v410_v52  ;;  %v545_v3 = vld [vmem:[#allocation6 + $0x640] sm:$0xff]  ;;  %v1632_v8 = vpack.c.bf16 %v413_v61, %v409_v60 }
  0xbb   :  { %v550_v58 = vld [vmem:[#allocation6 + $0x668] sm:$0xff]  ;;  %1627 = vmatprep.subr.bf16.mxu1 %v1626_v51  ;;  %1695 = vmatprep.subr.bf16.mxu0 %v1694_v53  ;;  %v549_v4 = vld [vmem:[#allocation6 + $0x660] sm:$0xff] }
  0xbc   :  { %v418_v1 = vld [vmem:[#allocation6 + $0x248] sm:$0xff]  ;;  %v1698_v2 = vpack.c.bf16 %v550_v58, %v546_v57  ;;  %v417_v9 = vld [vmem:[#allocation6 + $0x240] sm:$0xff]  ;;  %v1700_v11 = vpack.c.bf16 %v549_v4, %v545_v3 }
  0xbd   :  { %v422_v5 = vld [vmem:[#allocation6 + $0x268] sm:$0xff]  ;;  %v421_v10 = vld [vmem:[#allocation6 + $0x260] sm:$0xff] }
  0xbe   :  { %v554_v6 = vld [vmem:[#allocation6 + $0x688] sm:$0xff]  ;;  %1629 = vmatpush1.bf16.msra.mxu1 %v1628_v59  ;;  %1697 = vmatpush1.bf16.msra.mxu0 %v1696_v62  ;;  %v1634_v12 = vpack.c.bf16 %v422_v5, %v418_v1  ;;  %v553_v15 = vld [vmem:[#allocation6 + $0x680] sm:$0xff]  ;;  %v1636_v20 = vpack.c.bf16 %v421_v10, %v417_v9 }
  0xbf   :  { %v558_v7 = vld [vmem:[#allocation6 + $0x6a8] sm:$0xff]  ;;  %1631 = vmatprep.subr.bf16.mxu1 %v1630_v63  ;;  %1699 = vmatprep.subr.bf16.mxu0 %v1698_v2  ;;  %v557_v16 = vld [vmem:[#allocation6 + $0x6a0] sm:$0xff] }
  0xc0   :  { %v426_v13 = vld [vmem:[#allocation6 + $0x288] sm:$0xff]  ;;  %v1702_v14 = vpack.c.bf16 %v558_v7, %v554_v6  ;;  %v425_v21 = vld [vmem:[#allocation6 + $0x280] sm:$0xff]  ;;  %v1704_v23 = vpack.c.bf16 %v557_v16, %v553_v15  ;;  %v352_v16 = vld [vmem:[#allocation6 + $0x38] sm:$0xff] }
  0xc1   :  { %v430_v17 = vld [vmem:[#allocation6 + $0x2a8] sm:$0xff]  ;;  %v429_v22 = vld [vmem:[#allocation6 + $0x2a0] sm:$0xff] }
  0xc2   :  { %v562_v18 = vld [vmem:[#allocation6 + $0x6c8] sm:$0xff]  ;;  %1633 = vmatpush1.bf16.msra.mxu1 %v1632_v8  ;;  %1701 = vmatpush1.bf16.msra.mxu0 %v1700_v11  ;;  %v1638_v24 = vpack.c.bf16 %v430_v17, %v426_v13  ;;  %v561_v27 = vld [vmem:[#allocation6 + $0x6c0] sm:$0xff]  ;;  %v1640_v32 = vpack.c.bf16 %v429_v22, %v425_v21 }
  0xc3   :  { %v566_v19 = vld [vmem:[#allocation6 + $0x6e8] sm:$0xff]  ;;  %1635 = vmatprep.subr.bf16.mxu1 %v1634_v12  ;;  %1703 = vmatprep.subr.bf16.mxu0 %v1702_v14  ;;  %v565_v28 = vld [vmem:[#allocation6 + $0x6e0] sm:$0xff]  ;;  %v348_v14 = vld [vmem:[#allocation6 + $0x18] sm:$0xff] }
  0xc4   :  { %v434_v25 = vld [vmem:[#allocation6 + $0x2c8] sm:$0xff]  ;;  %v1706_v26 = vpack.c.bf16 %v566_v19, %v562_v18  ;;  %v433_v33 = vld [vmem:[#allocation6 + $0x2c0] sm:$0xff]  ;;  %v1708_v34 = vpack.c.bf16 %v565_v28, %v561_v27  ;;  %v1726_v17 = vpack.c.bf16 %v352_v16, %v348_v14  ;;  %v160_v27 = vld [vmem:[#allocation4] sm:$0xf] }
  0xc5   :  { %v438_v29 = vld [vmem:[#allocation6 + $0x2e8] sm:$0xff]  ;;  %v437_v36 = vld [vmem:[#allocation6 + $0x2e0] sm:$0xff]  ;;  %v375_v16 = vld [vmem:[#allocation6 + $0xf0] sm:$0xff] }
  0xc6   :  { %v570_v30 = vld [vmem:[#allocation6 + $0x708] sm:$0xff]  ;;  %1637 = vmatpush1.bf16.msra.mxu1 %v1636_v20  ;;  %1705 = vmatpush1.bf16.msra.mxu0 %v1704_v23  ;;  %v1642_v35 = vpack.c.bf16 %v438_v29, %v434_v25  ;;  %v569_v38 = vld [vmem:[#allocation6 + $0x700] sm:$0xff]  ;;  %v1644_v42 = vpack.c.bf16 %v437_v36, %v433_v33  ;;  %v347_v36 = vld [vmem:[#allocation6 + $0x10] sm:$0xff] }
  0xc7   :  { %v574_v31 = vld [vmem:[#allocation6 + $0x728] sm:$0xff]  ;;  %1639 = vmatprep.subr.bf16.mxu1 %v1638_v24  ;;  %1707 = vmatprep.subr.bf16.mxu0 %v1706_v26  ;;  %v573_v39 = vld [vmem:[#allocation6 + $0x720] sm:$0xff]  ;;  %v162_v24 = vlaneseq }
  0xc8   :  { %v1710_v37 = vpack.c.bf16 %v574_v31, %v570_v30  ;;  %v442_v40 = vld [vmem:[#allocation6 + $0x308] sm:$0xff]  ;;  %v1712_v43 = vpack.c.bf16 %v573_v39, %v569_v38  ;;  %v441_v45 = vld [vmem:[#allocation6 + $0x300] sm:$0xff]  ;;  %v356_v39 = vld [vmem:[#allocation6 + $0x58] sm:$0xff] }
  0xc9   :  { %v446_v41 = vld [vmem:[#allocation6 + $0x328] sm:$0xff]  ;;  %v445_v46 = vld [vmem:[#allocation6 + $0x320] sm:$0xff]  ;;  %v2475_v25 = vshrl.u32 %v162_v24, 7 }
  0xca   :  { %1641 = vmatpush1.bf16.msra.mxu1 %v1640_v32  ;;  %1709 = vmatpush1.bf16.msra.mxu0 %v1708_v34  ;;  %v1646_v44 = vpack.c.bf16 %v446_v41, %v442_v40  ;;  %v450_v47 = vld [vmem:[#allocation6 + $0x348] sm:$0xff]  ;;  %v1648_v49 = vpack.c.bf16 %v445_v46, %v441_v45  ;;  %v449_v51 = vld [vmem:[#allocation6 + $0x340] sm:$0xff]  ;;  %v360_v40 = vld [vmem:[#allocation6 + $0x78] sm:$0xff] }
  0xcb   :  { %1643 = vmatprep.subr.bf16.mxu1 %v1642_v35  ;;  %1711 = vmatprep.subr.bf16.mxu0 %v1710_v37  ;;  %v454_v48 = vld [vmem:[#allocation6 + $0x368] sm:$0xff]  ;;  %v453_v52 = vld [vmem:[#allocation6 + $0x360] sm:$0xff]  ;;  %v2478_v26 = vsub.s32 0, %v2475_v25  ;;  %v2481_v28 = vsub.s32 1, %v2475_v25  ;;  %v172_v31 = vsub.s32 2, %v2475_v25  ;;  %v176_v33 = vsub.s32 3, %v2475_v25 }
  0xcc   :  { %v1650_v50 = vpack.c.bf16 %v454_v48, %v450_v47  ;;  %v458_v53 = vld [vmem:[#allocation6 + $0x388] sm:$0xff]  ;;  %v1652_v55 = vpack.c.bf16 %v453_v52, %v449_v51  ;;  %v457_v57 = vld [vmem:[#allocation6 + $0x380] sm:$0xff]  ;;  %v351_v37 = vld [vmem:[#allocation6 + $0x30] sm:$0xff]  ;;  %v1730_v46 = vpack.c.bf16 %v360_v40, %v356_v39 }
  0xcd   :  { %v462_v54 = vld [vmem:[#allocation6 + $0x3a8] sm:$0xff]  ;;  %v461_v58 = vld [vmem:[#allocation6 + $0x3a0] sm:$0xff]  ;;  %v165_v29 = vrot.slane %v160_v27, %v2478_v26  ;;  %v169_v30 = vrot.slane %v160_v27, %v2481_v28  ;;  %v173_v41 = vrot.slane %v160_v27, %v172_v31  ;;  %v355_v47 = vld [vmem:[#allocation6 + $0x50] sm:$0xff] }
  0xce   :  { %1645 = vmatpush1.bf16.msra.mxu1 %v1644_v42  ;;  %1713 = vmatpush1.bf16.msra.mxu0 %v1712_v43  ;;  %v1654_v56 = vpack.c.bf16 %v462_v54, %v458_v53  ;;  %v1656_v59 = vpack.c.bf16 %v461_v58, %v457_v57  ;;  %v578_v60 = vld [vmem:[#allocation6 + $0x748] sm:$0xff]  ;;  %v577_v2 = vld [vmem:[#allocation6 + $0x740] sm:$0xff]  ;;  %v177_v43 = vrot.slane %v160_v27, %v176_v33  ;;  %v359_v48 = vld [vmem:[#allocation6 + $0x70] sm:$0xff] }
  0xcf   :  { %1647 = vmatprep.subr.bf16.mxu1 %v1646_v44  ;;  %v582_v61 = vld [vmem:[#allocation6 + $0x768] sm:$0xff]  ;;  %v581_v4 = vld [vmem:[#allocation6 + $0x760] sm:$0xff]  ;;  %v1728_v44 = vpack.c.bf16 %v351_v37, %v347_v36  ;;  %v368_v51 = vld [vmem:[#allocation6 + $0xb8] sm:$0xff]  ;;  %v1732_v58 = vpack.c.bf16 %v359_v48, %v355_v47 }
  0xd0   :  { %v1714_v62 = vpack.c.bf16 %v582_v61, %v578_v60  ;;  %v466_v63 = vld [vmem:[#allocation6 + $0x3c8] sm:$0xff]  ;;  %v465_v5 = vld [vmem:[#allocation6 + $0x3c0] sm:$0xff]  ;;  %v1716_v7 = vpack.c.bf16 %v581_v4, %v577_v2  ;;  %v922_v60 = vld [vmem:[#allocation9 + $0x10] sm:$0xff] }
  0xd1   :  { %v470_v1 = vld [vmem:[#allocation6 + $0x3e8] sm:$0xff]  ;;  %v469_v6 = vld [vmem:[#allocation6 + $0x3e0] sm:$0xff]  ;;  %v363_v2 = vld [vmem:[#allocation6 + $0x90] sm:$0xff] }
  0xd2   :  { %1649 = vmatpush1.bf16.msra.mxu1 %v1648_v49  ;;  %v1658_v3 = vpack.c.bf16 %v470_v1, %v466_v63  ;;  %1715 = vmatprep.subr.bf16.mxu0 %v1714_v62  ;;  %v1660_v8 = vpack.c.bf16 %v469_v6, %v465_v5  ;;  %v586_v9 = vld [vmem:[#allocation6 + $0x788] sm:$0xff]  ;;  %v585_v12 = vld [vmem:[#allocation6 + $0x780] sm:$0xff]  ;;  %v372_v5 = vld [vmem:[#allocation6 + $0xd8] sm:$0xff] }
  0xd3   :  { %1651 = vmatprep.subr.bf16.mxu1 %v1650_v50  ;;  %v590_v10 = vld [vmem:[#allocation6 + $0x7a8] sm:$0xff]  ;;  %1717 = vmatpush1.bf16.msra.mxu0 %v1716_v7  ;;  %v589_v13 = vld [vmem:[#allocation6 + $0x7a0] sm:$0xff]  ;;  %v364_v50 = vld [vmem:[#allocation6 + $0x98] sm:$0xff] }
  0xd4   :  { %v1718_v11 = vpack.c.bf16 %v590_v10, %v586_v9  ;;  %v1720_v15 = vpack.c.bf16 %v589_v13, %v585_v12  ;;  %v594_v18 = vld [vmem:[#allocation6 + $0x7c8] sm:$0xff]  ;;  %v593_v21 = vld [vmem:[#allocation6 + $0x7c0] sm:$0xff]  ;;  %v1734_v1 = vpack.c.bf16 %v368_v51, %v364_v50  ;;  %v376_v6 = vld [vmem:[#allocation6 + $0xf8] sm:$0xff] }
  0xd5   :  { %v598_v19 = vld [vmem:[#allocation6 + $0x7e8] sm:$0xff]  ;;  %v597_v22 = vld [vmem:[#allocation6 + $0x7e0] sm:$0xff]  ;;  %v926_v10 = vld [vmem:[#allocation9 + $0x30] sm:$0xff]  ;;  %v1738_v14 = vpack.c.bf16 %v376_v6, %v372_v5 }
  0xd6   :  { %1653 = vmatpush1.bf16.msra.mxu1 %v1652_v55  ;;  %1719 = vmatprep.subr.bf16.mxu0 %v1718_v11  ;;  %v1722_v20 = vpack.c.bf16 %v598_v19, %v594_v18  ;;  %v1724_v23 = vpack.c.bf16 %v597_v22, %v593_v21  ;;  %v921_v54 = vld [vmem:[#allocation9 + $0x8] sm:$0xff]  ;;  %v923_v55 = vld [vmem:[#allocation9 + $0x18] sm:$0xff]  ;;  %v924_v9 = vld [vmem:[#allocation9 + $0x20] sm:$0xff] }
  0xd7   :  { %1655 = vmatprep.subr.bf16.mxu1 %v1654_v56  ;;  %1721 = vmatpush1.bf16.msra.mxu0 %v1720_v15  ;;  %v920_v56 = vld [vmem:[#allocation9] sm:$0xff]  ;;  %v925_v61 = vld [vmem:[#allocation9 + $0x28] sm:$0xff]  ;;  %v927_v62 = vld [vmem:[#allocation9 + $0x38] sm:$0xff]  ;;  %v1860_v19 = vpack.c.bf16 %v926_v10, %v924_v9 }
  0xd8   :  { %1723 = vmatprep.subr.bf16.mxu0 %v1722_v20  ;;  %v1856_v7 = vpack.c.bf16 %v922_v60, %v920_v56  ;;  %v929_v12 = vld [vmem:[#allocation9 + $0x48] sm:$0xff]  ;;  %v931_v13 = vld [vmem:[#allocation9 + $0x58] sm:$0xff]  ;;  %v928_v21 = vld [vmem:[#allocation9 + $0x40] sm:$0xff] }
  0xd9   :  { %v371_v15 = vld [vmem:[#allocation6 + $0xd0] sm:$0xff]  ;;  %v384_v18 = vld [vmem:[#allocation6 + $0x138] sm:$0xff]  ;;  %v1862_v20 = vpack.c.bf16 %v931_v13, %v929_v12  ;;  %v932_v39 = vld [vmem:[#allocation9 + $0x60] sm:$0xff] }
  0xda   :  { %1657 = vmatpush1.bf16.msra.mxu1 %v1656_v59  ;;  %v1854_v59 = vpack.c.bf16 %v923_v55, %v921_v54  ;;  %v930_v22 = vld [vmem:[#allocation9 + $0x50] sm:$0xff]  ;;  %v933_v24 = vld [vmem:[#allocation9 + $0x68] sm:$0xff]  ;;  %v935_v27 = vld [vmem:[#allocation9 + $0x78] sm:$0xff] }
  0xdb   :  { %1659 = vmatprep.subr.bf16.mxu1 %v1658_v3  ;;  %1725 = vmatpush1.bf16.msra.mxu0 %v1724_v23  ;;  %v367_v3 = vld [vmem:[#allocation6 + $0xb0] sm:$0xff]  ;;  %v1740_v23 = vpack.c.bf16 %v375_v16, %v371_v15  ;;  %v392_v36 = vld [vmem:[#allocation6 + $0x178] sm:$0xff]  ;;  %v1864_v37 = vpack.c.bf16 %v930_v22, %v928_v21  ;;  %v940_v5 = vld [vmem:[#allocation9 + $0xa0] sm:$0xff] }
  0xdc   :  { %1855 = vmatprep.subr.bf16.mxu0 %v1854_v59  ;;  %v1736_v11 = vpack.c.bf16 %v367_v3, %v363_v2  ;;  %v934_v40 = vld [vmem:[#allocation9 + $0x70] sm:$0xff]  ;;  %v941_v56 = vld [vmem:[#allocation9 + $0xa8] sm:$0xff]  ;;  %v947_v9 = vld [vmem:[#allocation9 + $0xd8] sm:$0xff] }
  0xdd   :  { %v391_v47 = vld [vmem:[#allocation6 + $0x170] sm:$0xff]  ;;  %v396_v48 = vld [vmem:[#allocation6 + $0x198] sm:$0xff]  ;;  %v1868_v50 = vpack.c.bf16 %v934_v40, %v932_v39 }
  0xde   :  { %1661 = vmatpush1.bf16.msra.mxu1 %v1660_v8  ;;  %v1858_v8 = vpack.c.bf16 %v927_v62, %v925_v61  ;;  %v938_v54 = vld [vmem:[#allocation9 + $0x90] sm:$0xff]  ;;  %v951_v21 = vld [vmem:[#allocation9 + $0xf8] sm:$0xff] }
  0xdf   :  { %1727 = vmatprep.subr.bf16.mxu1 %v1726_v17  ;;  %v380_v17 = vld [vmem:[#allocation6 + $0x118] sm:$0xff]  ;;  %v395_v60 = vld [vmem:[#allocation6 + $0x190] sm:$0xff] }
  0xe0   :  { %v399_v61 = vld [vmem:[#allocation6 + $0x1b0] sm:$0xff]  ;;  %v404_v62 = vld [vmem:[#allocation6 + $0x1d8] sm:$0xff] }
  0xe1   :  { %v942_v6 = vld [vmem:[#allocation9 + $0xb0] sm:$0xff]  ;;  %v955_v39 = vld [vmem:[#allocation9 + $0x118] sm:$0xff] }
  0xe2   :  { %v407_v12 = vld [vmem:[#allocation6 + $0x1f0] sm:$0xff]  ;;  %v412_v13 = vld [vmem:[#allocation6 + $0x218] sm:$0xff]  ;;  %v1876_v15 = vpack.c.bf16 %v942_v6, %v940_v5 }
  0xe3   :  { %v963_v5 = vld [vmem:[#allocation9 + $0x158] sm:$0xff]  ;;  %v919_v25 = vld [vmem:[%s2572_s8 + $0x38] sm:$0xff] }
 0x16e   :  { %v265_v32 = vpop.f32.mrb[0].mxu1 }
 0x16f   :  { %v2487_v34 = vadd.f32 %v265_v32, %v165_v29  ;;  %v267_v35 = vpop.f32.mrb[1].mxu1  ;;  %v1742_v29 = vpack.c.bf16 %v384_v18, %v380_v17  ;;  %v383_v32 = vld [vmem:[#allocation6 + $0x130] sm:$0xff]  ;;  %v944_v17 = vld [vmem:[#allocation9 + $0xc0] sm:$0xff] }
 0x170   :  { %v268_v38 = vadd.f32 %v267_v35, %v169_v30  ;;  %v379_v30 = vld [vmem:[#allocation6 + $0x110] sm:$0xff]  ;;  %v388_v35 = vld [vmem:[#allocation6 + $0x158] sm:$0xff] }
 0x171   :  { %v341_v45 = vmax.f32 %v2487_v34, 0.0  ;;  %v946_v18 = vld [vmem:[#allocation9 + $0xd0] sm:$0xff] }
 0x172   :  { %v342_v42 = vmax.f32 %v268_v38, 0.0  ;;  %v1866_v38 = vpack.c.bf16 %v935_v27, %v933_v24  ;;  %v415_v24 = vld [vmem:[#allocation6 + $0x230] sm:$0xff]  ;;  %v420_v27 = vld [vmem:[#allocation6 + $0x258] sm:$0xff] }
 0x173   :  { %v512_v34 = vld [vmem:[#allocation6 + $0x538] sm:$0xff] }
 0x174   :  { %v336_v49 = vpop.f32.mrb[2].mxu1  ;;  %687 = vmatprep.mubr.f32.mxu1 %v342_v42 }
 0x175   :  { %v2494_v52 = vadd.f32 %v336_v49, %v173_v41  ;;  %v338_v53 = vpop.f32.mrb[3].mxu1  ;;  %688 = vmatmul.mubr.f32.vlgmr.msra.gmra.mrb[4].mxu1 %v341_v45  ;;  %v1744_v41 = vpack.c.bf16 %v383_v32, %v379_v30  ;;  %v400_v49 = vld [vmem:[#allocation6 + $0x1b8] sm:$0xff]  ;;  %v1880_v30 = vpack.c.bf16 %v946_v18, %v944_v17 }
 0x176   :  { %v2498_v57 = vadd.f32 %v338_v53, %v177_v43  ;;  %1729 = vmatpush1.bf16.msra.mxu1 %v1728_v44  ;;  %829 = vmatprep.mubr.f32.mxu1 %v342_v42  ;;  %v937_v42 = vld [vmem:[#allocation9 + $0x88] sm:$0xff]  ;;  %v939_v43 = vld [vmem:[#allocation9 + $0x98] sm:$0xff]  ;;  %v1746_v44 = vpack.c.bf16 %v392_v36, %v388_v35  ;;  %v936_v53 = vld [vmem:[#allocation9 + $0x80] sm:$0xff]  ;;  %v1750_v59 = vpack.c.bf16 %v400_v49, %v396_v48 }
 0x177   :  { %v343_v63 = vmax.f32 %v2494_v52, 0.0  ;;  %1731 = vmatprep.subr.bf16.mxu1 %v1730_v46  ;;  %v387_v46 = vld [vmem:[#allocation6 + $0x150] sm:$0xff]  ;;  %v1870_v51 = vpack.c.bf16 %v939_v43, %v937_v42  ;;  %v1872_v2 = vpack.c.bf16 %v938_v54, %v936_v53  ;;  %v948_v35 = vld [vmem:[#allocation9 + $0xe0] sm:$0xff]  ;;  %v428_v43 = vld [vmem:[#allocation6 + $0x298] sm:$0xff] }
 0x178   :  { %v344_v4 = vmax.f32 %v2498_v57, 0.0  ;;  %v1748_v55 = vpack.c.bf16 %v391_v47, %v387_v46  ;;  %v950_v36 = vld [vmem:[#allocation9 + $0xf0] sm:$0xff]  ;;  %v952_v48 = vld [vmem:[#allocation9 + $0x100] sm:$0xff]  ;;  %v959_v53 = vld [vmem:[#allocation9 + $0x138] sm:$0xff] }
 0x179   :  { %v423_v42 = vld [vmem:[#allocation6 + $0x270] sm:$0xff]  ;;  %v1884_v46 = vpack.c.bf16 %v950_v36, %v948_v35  ;;  %v967_v17 = vld [vmem:[#allocation9 + $0x178] sm:$0xff] }
 0x17a   :  { %1733 = vmatpush1.bf16.msra.mxu1 %v1732_v58  ;;  %758 = vmatprep.mubr.f32.mxu0 %v344_v4  ;;  %v943_v58 = vld [vmem:[#allocation9 + $0xb8] sm:$0xff]  ;;  %v954_v49 = vld [vmem:[#allocation9 + $0x110] sm:$0xff]  ;;  %v989_v52 = vld [vmem:[#allocation9 + $0x228] sm:$0xff] }
 0x17b   :  { %759 = vmatmul.mubr.f32.vlgmr.msra.gmra.mrb[0].mxu0 %v343_v63  ;;  %1735 = vmatprep.subr.bf16.mxu1 %v1734_v1  ;;  %v408_v1 = vld [vmem:[#allocation6 + $0x1f8] sm:$0xff]  ;;  %v1874_v3 = vpack.c.bf16 %v943_v58, %v941_v56  ;;  %v431_v56 = vld [vmem:[#allocation6 + $0x2b0] sm:$0xff] }
 0x17c   :  { %1857 = vmatpush1.bf16.msra.mxu0 %v1856_v7  ;;  %v1752_v7 = vpack.c.bf16 %v399_v61, %v395_v60  ;;  %v1754_v10 = vpack.c.bf16 %v408_v1, %v404_v62  ;;  %v436_v58 = vld [vmem:[#allocation6 + $0x2d8] sm:$0xff]  ;;  %v1888_v60 = vpack.c.bf16 %v954_v49, %v952_v48  ;;  %v956_v62 = vld [vmem:[#allocation9 + $0x120] sm:$0xff]  ;;  %v459_v48 = vld [vmem:[#allocation6 + $0x390] sm:$0xff] }
 0x17d   :  { %1859 = vmatprep.subr.bf16.mxu0 %v1858_v8  ;;  %v945_v8 = vld [vmem:[#allocation9 + $0xc8] sm:$0xff]  ;;  %v958_v1 = vld [vmem:[#allocation9 + $0x130] sm:$0xff]  ;;  %v971_v35 = vld [vmem:[#allocation9 + $0x198] sm:$0xff] }
 0x17e   :  { %1737 = vmatpush1.bf16.msra.mxu1 %v1736_v11  ;;  %v403_v11 = vld [vmem:[#allocation6 + $0x1d0] sm:$0xff]  ;;  %v1878_v16 = vpack.c.bf16 %v947_v9, %v945_v8  ;;  %v444_v9 = vld [vmem:[#allocation6 + $0x318] sm:$0xff] }
 0x17f   :  { %1739 = vmatprep.subr.bf16.mxu1 %v1738_v14  ;;  %v416_v14 = vld [vmem:[#allocation6 + $0x238] sm:$0xff]  ;;  %v439_v8 = vld [vmem:[#allocation6 + $0x2f0] sm:$0xff] }
 0x180   :  { %1861 = vmatpush1.bf16.msra.mxu0 %v1860_v19  ;;  %v1756_v19 = vpack.c.bf16 %v407_v12, %v403_v11  ;;  %v1758_v22 = vpack.c.bf16 %v416_v14, %v412_v13  ;;  %v1892_v11 = vpack.c.bf16 %v958_v1, %v956_v62  ;;  %v960_v13 = vld [vmem:[#allocation9 + $0x140] sm:$0xff]  ;;  %v962_v14 = vld [vmem:[#allocation9 + $0x150] sm:$0xff] }
 0x181   :  { %1863 = vmatprep.subr.bf16.mxu0 %v1862_v20  ;;  %v949_v20 = vld [vmem:[#allocation9 + $0xe8] sm:$0xff] }
 0x182   :  { %1741 = vmatpush1.bf16.msra.mxu1 %v1740_v23  ;;  %v411_v23 = vld [vmem:[#allocation6 + $0x210] sm:$0xff]  ;;  %v1882_v32 = vpack.c.bf16 %v951_v21, %v949_v20  ;;  %v452_v21 = vld [vmem:[#allocation6 + $0x358] sm:$0xff] }
 0x183   :  { %1743 = vmatprep.subr.bf16.mxu1 %v1742_v29  ;;  %v424_v29 = vld [vmem:[#allocation6 + $0x278] sm:$0xff]  ;;  %v447_v20 = vld [vmem:[#allocation6 + $0x330] sm:$0xff] }
 0x184   :  { %1865 = vmatpush1.bf16.msra.mxu0 %v1864_v37  ;;  %v1760_v37 = vpack.c.bf16 %v415_v24, %v411_v23  ;;  %v1762_v40 = vpack.c.bf16 %v424_v29, %v420_v27  ;;  %v1896_v23 = vpack.c.bf16 %v962_v14, %v960_v13  ;;  %v964_v27 = vld [vmem:[#allocation9 + $0x160] sm:$0xff]  ;;  %v966_v29 = vld [vmem:[#allocation9 + $0x170] sm:$0xff] }
 0x185   :  { %1867 = vmatprep.subr.bf16.mxu0 %v1866_v38  ;;  %v953_v38 = vld [vmem:[#allocation9 + $0x108] sm:$0xff] }
 0x186   :  { %1745 = vmatpush1.bf16.msra.mxu1 %v1744_v41  ;;  %v419_v41 = vld [vmem:[#allocation6 + $0x250] sm:$0xff]  ;;  %v1886_v47 = vpack.c.bf16 %v955_v39, %v953_v38  ;;  %v460_v39 = vld [vmem:[#allocation6 + $0x398] sm:$0xff] }
 0x187   :  { %1747 = vmatprep.subr.bf16.mxu1 %v1746_v44  ;;  %v432_v44 = vld [vmem:[#allocation6 + $0x2b8] sm:$0xff]  ;;  %v455_v38 = vld [vmem:[#allocation6 + $0x370] sm:$0xff] }
 0x188   :  { %1869 = vmatpush1.bf16.msra.mxu0 %v1868_v50  ;;  %v1764_v50 = vpack.c.bf16 %v423_v42, %v419_v41  ;;  %v1766_v54 = vpack.c.bf16 %v432_v44, %v428_v43  ;;  %v1900_v41 = vpack.c.bf16 %v966_v29, %v964_v27  ;;  %v968_v43 = vld [vmem:[#allocation9 + $0x180] sm:$0xff]  ;;  %v970_v44 = vld [vmem:[#allocation9 + $0x190] sm:$0xff] }
 0x189   :  { %1871 = vmatprep.subr.bf16.mxu0 %v1870_v51  ;;  %v957_v51 = vld [vmem:[#allocation9 + $0x128] sm:$0xff]  ;;  %v520_v27 = vld [vmem:[#allocation6 + $0x578] sm:$0xff] }
 0x18a   :  { %1749 = vmatpush1.bf16.msra.mxu1 %v1748_v55  ;;  %v427_v55 = vld [vmem:[#allocation6 + $0x290] sm:$0xff]  ;;  %v1890_v61 = vpack.c.bf16 %v959_v53, %v957_v51  ;;  %v472_v51 = vld [vmem:[#allocation6 + $0x3f8] sm:$0xff]  ;;  %v1904_v53 = vpack.c.bf16 %v970_v44, %v968_v43 }
 0x18b   :  { %1751 = vmatprep.subr.bf16.mxu1 %v1750_v59  ;;  %v440_v59 = vld [vmem:[#allocation6 + $0x2f8] sm:$0xff]  ;;  %v463_v49 = vld [vmem:[#allocation6 + $0x3b0] sm:$0xff] }
 0x18c   :  { %1873 = vmatpush1.bf16.msra.mxu0 %v1872_v2  ;;  %v1768_v2 = vpack.c.bf16 %v431_v56, %v427_v55  ;;  %v1770_v6 = vpack.c.bf16 %v440_v59, %v436_v58  ;;  %v467_v56 = vld [vmem:[#allocation6 + $0x3d0] sm:$0xff]  ;;  %v476_v59 = vld [vmem:[#allocation6 + $0x418] sm:$0xff] }
 0x18d   :  { %1875 = vmatprep.subr.bf16.mxu0 %v1874_v3  ;;  %v961_v3 = vld [vmem:[#allocation9 + $0x148] sm:$0xff]  ;;  %v975_v44 = vld [vmem:[#allocation9 + $0x1b8] sm:$0xff] }
 0x18e   :  { %1753 = vmatpush1.bf16.msra.mxu1 %v1752_v7  ;;  %v435_v7 = vld [vmem:[#allocation6 + $0x2d0] sm:$0xff]  ;;  %v1894_v12 = vpack.c.bf16 %v963_v5, %v961_v3  ;;  %v484_v3 = vld [vmem:[#allocation6 + $0x458] sm:$0xff] }
 0x18f   :  { %1755 = vmatprep.subr.bf16.mxu1 %v1754_v10  ;;  %v448_v10 = vld [vmem:[#allocation6 + $0x338] sm:$0xff]  ;;  %v471_v58 = vld [vmem:[#allocation6 + $0x3f0] sm:$0xff] }
 0x190   :  { %1877 = vmatpush1.bf16.msra.mxu0 %v1876_v15  ;;  %v1772_v15 = vpack.c.bf16 %v439_v8, %v435_v7  ;;  %v1774_v18 = vpack.c.bf16 %v448_v10, %v444_v9  ;;  %v475_v1 = vld [vmem:[#allocation6 + $0x410] sm:$0xff]  ;;  %v488_v5 = vld [vmem:[#allocation6 + $0x478] sm:$0xff] }
 0x191   :  { %1879 = vmatprep.subr.bf16.mxu0 %v1878_v16  ;;  %v965_v16 = vld [vmem:[#allocation9 + $0x168] sm:$0xff]  ;;  %v1794_v7 = vpack.c.bf16 %v488_v5, %v484_v3  ;;  %v492_v10 = vld [vmem:[#allocation6 + $0x498] sm:$0xff] }
 0x192   :  { %1757 = vmatpush1.bf16.msra.mxu1 %v1756_v19  ;;  %v443_v19 = vld [vmem:[#allocation6 + $0x310] sm:$0xff]  ;;  %v1898_v24 = vpack.c.bf16 %v967_v17, %v965_v16  ;;  %v500_v16 = vld [vmem:[#allocation6 + $0x4d8] sm:$0xff] }
 0x193   :  { %1759 = vmatprep.subr.bf16.mxu1 %v1758_v22  ;;  %v456_v22 = vld [vmem:[#allocation6 + $0x378] sm:$0xff]  ;;  %v483_v8 = vld [vmem:[#allocation6 + $0x450] sm:$0xff] }
 0x194   :  { %1881 = vmatpush1.bf16.msra.mxu0 %v1880_v30  ;;  %v1776_v30 = vpack.c.bf16 %v447_v20, %v443_v19  ;;  %v1778_v36 = vpack.c.bf16 %v456_v22, %v452_v21  ;;  %v487_v9 = vld [vmem:[#allocation6 + $0x470] sm:$0xff]  ;;  %v504_v17 = vld [vmem:[#allocation6 + $0x4f8] sm:$0xff] }
 0x195   :  { %1883 = vmatprep.subr.bf16.mxu0 %v1882_v32  ;;  %v969_v32 = vld [vmem:[#allocation9 + $0x188] sm:$0xff]  ;;  %v1802_v19 = vpack.c.bf16 %v504_v17, %v500_v16  ;;  %v508_v22 = vld [vmem:[#allocation6 + $0x518] sm:$0xff] }
 0x196   :  { %1761 = vmatpush1.bf16.msra.mxu1 %v1760_v37  ;;  %v451_v37 = vld [vmem:[#allocation6 + $0x350] sm:$0xff]  ;;  %v1902_v42 = vpack.c.bf16 %v971_v35, %v969_v32  ;;  %v1806_v57 = vpack.c.bf16 %v512_v34, %v508_v22  ;;  %v987_v34 = vld [vmem:[#allocation9 + $0x218] sm:$0xff] }
 0x197   :  { %1763 = vmatprep.subr.bf16.mxu1 %v1762_v40  ;;  %v464_v40 = vld [vmem:[#allocation6 + $0x3b8] sm:$0xff]  ;;  %v491_v14 = vld [vmem:[#allocation6 + $0x490] sm:$0xff] }
 0x198   :  { %1885 = vmatpush1.bf16.msra.mxu0 %v1884_v46  ;;  %v1780_v46 = vpack.c.bf16 %v455_v38, %v451_v37  ;;  %v499_v20 = vld [vmem:[#allocation6 + $0x4d0] sm:$0xff]  ;;  %v528_v37 = vld [vmem:[#allocation6 + $0x5b8] sm:$0xff] }
 0x199   :  { %1887 = vmatprep.subr.bf16.mxu0 %v1886_v47  ;;  %v1782_v47 = vpack.c.bf16 %v464_v40, %v460_v39  ;;  %v503_v21 = vld [vmem:[#allocation6 + $0x4f0] sm:$0xff] }
 0x19a   :  { %1765 = vmatpush1.bf16.msra.mxu1 %v1764_v50  ;;  %v468_v50 = vld [vmem:[#allocation6 + $0x3d8] sm:$0xff]  ;;  %v515_v32 = vld [vmem:[#allocation6 + $0x550] sm:$0xff] }
 0x19b   :  { %1767 = vmatprep.subr.bf16.mxu1 %v1766_v54  ;;  %v1784_v54 = vpack.c.bf16 %v463_v49, %v459_v48  ;;  %v1786_v55 = vpack.c.bf16 %v472_v51, %v468_v50  ;;  %v519_v35 = vld [vmem:[#allocation6 + $0x570] sm:$0xff]  ;;  %v972_v48 = vld [vmem:[#allocation9 + $0x1a0] sm:$0xff] }
 0x19c   :  { %1889 = vmatpush1.bf16.msra.mxu0 %v1888_v60  ;;  %v480_v60 = vld [vmem:[#allocation6 + $0x438] sm:$0xff]  ;;  %v1812_v38 = vpack.c.bf16 %v519_v35, %v515_v32  ;;  %v523_v39 = vld [vmem:[#allocation6 + $0x590] sm:$0xff] }
 0x19d   :  { %1891 = vmatprep.subr.bf16.mxu0 %v1890_v61  ;;  %v1788_v61 = vpack.c.bf16 %v471_v58, %v467_v56  ;;  %v1790_v62 = vpack.c.bf16 %v480_v60, %v476_v59  ;;  %v527_v40 = vld [vmem:[#allocation6 + $0x5b0] sm:$0xff]  ;;  %v540_v59 = vld [vmem:[#allocation6 + $0x618] sm:$0xff] }
 0x19e   :  { %1769 = vmatpush1.bf16.msra.mxu1 %v1768_v2  ;;  %v479_v2 = vld [vmem:[#allocation6 + $0x430] sm:$0xff]  ;;  %v1816_v51 = vpack.c.bf16 %v527_v40, %v523_v39 }
 0x19f   :  { %1771 = vmatprep.subr.bf16.mxu1 %v1770_v6  ;;  %v1792_v6 = vpack.c.bf16 %v479_v2, %v475_v1  ;;  %v973_v43 = vld [vmem:[#allocation9 + $0x1a8] sm:$0xff]  ;;  %v974_v49 = vld [vmem:[#allocation9 + $0x1b0] sm:$0xff] }
 0x1a0   :  { %1893 = vmatpush1.bf16.msra.mxu0 %v1892_v11  ;;  %v496_v11 = vld [vmem:[#allocation6 + $0x4b8] sm:$0xff]  ;;  %v1908_v50 = vpack.c.bf16 %v974_v49, %v972_v48  ;;  %v531_v56 = vld [vmem:[#allocation6 + $0x5d0] sm:$0xff] }
 0x1a1   :  { %1895 = vmatprep.subr.bf16.mxu0 %v1894_v12  ;;  %v1796_v12 = vpack.c.bf16 %v487_v9, %v483_v8  ;;  %v1798_v13 = vpack.c.bf16 %v496_v11, %v492_v10  ;;  %v535_v58 = vld [vmem:[#allocation6 + $0x5f0] sm:$0xff]  ;;  %v548_v8 = vld [vmem:[#allocation6 + $0x658] sm:$0xff] }
 0x1a2   :  { %1773 = vmatpush1.bf16.msra.mxu1 %v1772_v15  ;;  %v495_v15 = vld [vmem:[#allocation6 + $0x4b0] sm:$0xff]  ;;  %v1820_v3 = vpack.c.bf16 %v535_v58, %v531_v56  ;;  %v983_v10 = vld [vmem:[#allocation9 + $0x1f8] sm:$0xff] }
 0x1a3   :  { %1775 = vmatprep.subr.bf16.mxu1 %v1774_v18  ;;  %v1800_v18 = vpack.c.bf16 %v495_v15, %v491_v14  ;;  %v978_v1 = vld [vmem:[#allocation9 + $0x1d0] sm:$0xff]  ;;  %v981_v9 = vld [vmem:[#allocation9 + $0x1e8] sm:$0xff] }
 0x1a4   :  { %1897 = vmatpush1.bf16.msra.mxu0 %v1896_v23  ;;  %v511_v23 = vld [vmem:[#allocation6 + $0x530] sm:$0xff]  ;;  %v552_v11 = vld [vmem:[#allocation6 + $0x678] sm:$0xff] }
 0x1a5   :  { %1899 = vmatprep.subr.bf16.mxu0 %v1898_v24  ;;  %v516_v24 = vld [vmem:[#allocation6 + $0x558] sm:$0xff]  ;;  %v539_v5 = vld [vmem:[#allocation6 + $0x610] sm:$0xff]  ;;  %v1826_v17 = vpack.c.bf16 %v552_v11, %v548_v8 }
 0x1a6   :  { %1777 = vmatpush1.bf16.msra.mxu1 %v1776_v30  ;;  %v1810_v30 = vpack.c.bf16 %v520_v27, %v516_v24  ;;  %v982_v14 = vld [vmem:[#allocation9 + $0x1f0] sm:$0xff]  ;;  %v985_v22 = vld [vmem:[#allocation9 + $0x208] sm:$0xff] }
 0x1a7   :  { %1779 = vmatprep.subr.bf16.mxu1 %v1778_v36  ;;  %v524_v36 = vld [vmem:[#allocation6 + $0x598] sm:$0xff]  ;;  %v559_v24 = vld [vmem:[#allocation6 + $0x6b0] sm:$0xff] }
 0x1a8   :  { %1901 = vmatpush1.bf16.msra.mxu0 %v1900_v41  ;;  %v1814_v41 = vpack.c.bf16 %v528_v37, %v524_v36  ;;  %v564_v27 = vld [vmem:[#allocation6 + $0x6d8] sm:$0xff]  ;;  %v563_v35 = vld [vmem:[#allocation6 + $0x6d0] sm:$0xff] }
 0x1a9   :  { %1903 = vmatprep.subr.bf16.mxu0 %v1902_v42  ;;  %v532_v42 = vld [vmem:[#allocation6 + $0x5d8] sm:$0xff]  ;;  %v567_v36 = vld [vmem:[#allocation6 + $0x6f0] sm:$0xff] }
 0x1aa   :  { %1781 = vmatpush1.bf16.msra.mxu1 %v1780_v46  ;;  %v536_v46 = vld [vmem:[#allocation6 + $0x5f8] sm:$0xff]  ;;  %v1836_v39 = vpack.c.bf16 %v567_v36, %v563_v35  ;;  %v579_v48 = vld [vmem:[#allocation6 + $0x750] sm:$0xff]  ;;  %v996_v35 = vld [vmem:[#allocation9 + $0x260] sm:$0xff] }
 0x1ab   :  { %1783 = vmatprep.subr.bf16.mxu1 %v1782_v47  ;;  %v1906_v47 = vpack.c.bf16 %v975_v44, %v973_v43  ;;  %v572_v37 = vld [vmem:[#allocation6 + $0x718] sm:$0xff]  ;;  %v583_v49 = vld [vmem:[#allocation6 + $0x770] sm:$0xff] }
 0x1ac   :  { %1905 = vmatpush1.bf16.msra.mxu0 %v1904_v53  ;;  %v977_v53 = vld [vmem:[#allocation9 + $0x1c8] sm:$0xff]  ;;  %v580_v43 = vld [vmem:[#allocation6 + $0x758] sm:$0xff] }
 0x1ad   :  { %1907 = vmatprep.subr.bf16.mxu0 %v1906_v47  ;;  %v584_v44 = vld [vmem:[#allocation6 + $0x778] sm:$0xff]  ;;  %v591_v56 = vld [vmem:[#allocation6 + $0x7b0] sm:$0xff] }
 0x1ae   :  { %1785 = vmatpush1.bf16.msra.mxu1 %v1784_v54  ;;  %v979_v54 = vld [vmem:[#allocation9 + $0x1d8] sm:$0xff]  ;;  %v1842_v47 = vpack.c.bf16 %v584_v44, %v580_v43  ;;  %v998_v36 = vld [vmem:[#allocation9 + $0x270] sm:$0xff]  ;;  %v1005_v43 = vld [vmem:[#allocation9 + $0x2a8] sm:$0xff] }
 0x1af   :  { %1787 = vmatprep.subr.bf16.mxu1 %v1786_v55  ;;  %v1818_v55 = vpack.c.bf16 %v536_v46, %v532_v42  ;;  %v1910_v60 = vpack.c.bf16 %v979_v54, %v977_v53  ;;  %v575_v42 = vld [vmem:[#allocation6 + $0x730] sm:$0xff]  ;;  %v1844_v53 = vpack.c.bf16 %v583_v49, %v579_v48  ;;  %v596_v58 = vld [vmem:[#allocation6 + $0x7d8] sm:$0xff]  ;;  %v1004_v48 = vld [vmem:[#allocation9 + $0x2a0] sm:$0xff] }
 0x1b0   :  { %1909 = vmatpush1.bf16.msra.mxu0 %v1908_v50  ;;  %v588_v50 = vld [vmem:[#allocation6 + $0x798] sm:$0xff] }
 0x1b1   :  { %1911 = vmatprep.subr.bf16.mxu0 %v1910_v60  ;;  %v1007_v44 = vld [vmem:[#allocation9 + $0x2b8] sm:$0xff]  ;;  %v1006_v49 = vld [vmem:[#allocation9 + $0x2b0] sm:$0xff] }
 0x1b2   :  { %1789 = vmatpush1.bf16.msra.mxu1 %v1788_v61  ;;  %v544_v61 = vld [vmem:[#allocation6 + $0x638] sm:$0xff] }
 0x1b3   :  { %1791 = vmatprep.subr.bf16.mxu1 %v1790_v62  ;;  %v976_v62 = vld [vmem:[#allocation9 + $0x1c0] sm:$0xff] }
 0x1b4   :  { %v1912_v2 = vpack.c.bf16 %v978_v1, %v976_v62  ;;  %v595_v62 = vld [vmem:[#allocation6 + $0x7d0] sm:$0xff] }
 0x1b5   :  { %830 = vmatmul.mubr.f32.vlgmr.msra.gmra.mrb[6].mxu1 %v341_v45  ;;  %v1804_v45 = vpack.c.bf16 %v503_v21, %v499_v20  ;;  %v556_v20 = vld [vmem:[#allocation6 + $0x698] sm:$0xff]  ;;  %v599_v1 = vld [vmem:[#allocation6 + $0x7f0] sm:$0xff] }
 0x1b6   :  { %1793 = vmatpush1.bf16.msra.mxu1 %v1792_v6  ;;  %900 = vmatprep.mubr.f32.mxu1 %v344_v4  ;;  %v507_v4 = vld [vmem:[#allocation6 + $0x510] sm:$0xff]  ;;  %v560_v21 = vld [vmem:[#allocation6 + $0x6b8] sm:$0xff] }
 0x1b7   :  { %1795 = vmatprep.subr.bf16.mxu1 %v1794_v7  ;;  %v1808_v29 = vpack.c.bf16 %v511_v23, %v507_v4  ;;  %v543_v6 = vld [vmem:[#allocation6 + $0x630] sm:$0xff]  ;;  %v1822_v7 = vpack.c.bf16 %v544_v61, %v540_v59  ;;  %1913 = vmatpush1.bf16.msra.mxu0 %v1912_v2  ;;  %v1830_v4 = vpack.c.bf16 %v560_v21, %v556_v20  ;;  %v600_v59 = vld [vmem:[#allocation6 + $0x7f8] sm:$0xff]  ;;  %v988_v21 = vld [vmem:[#allocation9 + $0x220] sm:$0xff] }
 0x1b8   :  { %v1824_v16 = vpack.c.bf16 %v543_v6, %v539_v5  ;;  %v555_v23 = vld [vmem:[#allocation6 + $0x690] sm:$0xff]  ;;  %v1850_v61 = vpack.c.bf16 %v600_v59, %v596_v58  ;;  %v1852_v2 = vpack.c.bf16 %v599_v1, %v595_v62  ;;  %v1015_v59 = vld [vmem:[#allocation9 + $0x2f8] sm:$0xff]  ;;  %v1012_v62 = vld [vmem:[#allocation9 + $0x2e0] sm:$0xff] }
 0x1b9   :  { %v1013_v58 = vld [vmem:[#allocation9 + $0x2e8] sm:$0xff]  ;;  %v1014_v1 = vld [vmem:[#allocation9 + $0x2f0] sm:$0xff] }
 0x1ba   :  { %1797 = vmatpush1.bf16.msra.mxu1 %v1796_v12  ;;  %v1914_v12 = vpack.c.bf16 %v983_v10, %v981_v9 }
 0x1bb   :  { %1799 = vmatprep.subr.bf16.mxu1 %v1798_v13  ;;  %v980_v13 = vld [vmem:[#allocation9 + $0x1e0] sm:$0xff] }
 0x1bc   :  { %v1916_v15 = vpack.c.bf16 %v982_v14, %v980_v13  ;;  %1915 = vmatprep.subr.bf16.mxu0 %v1914_v12  ;;  %v984_v14 = vld [vmem:[#allocation9 + $0x200] sm:$0xff] }
 0x1be   :  { %1801 = vmatpush1.bf16.msra.mxu1 %v1800_v18  ;;  %v547_v18 = vld [vmem:[#allocation6 + $0x650] sm:$0xff]  ;;  %1917 = vmatpush1.bf16.msra.mxu0 %v1916_v15 }
 0x1bf   :  { %1803 = vmatprep.subr.bf16.mxu1 %v1802_v19  ;;  %v551_v19 = vld [vmem:[#allocation6 + $0x670] sm:$0xff] }
 0x1c0   :  { %v986_v15 = vld [vmem:[#allocation9 + $0x210] sm:$0xff] }
 0x1c2   :  { %1805 = vmatpush1.bf16.msra.mxu1 %v1804_v45  ;;  %v1828_v45 = vpack.c.bf16 %v551_v19, %v547_v18  ;;  %v1920_v18 = vpack.c.bf16 %v986_v15, %v984_v14  ;;  %v1020_v14 = vld [vmem:[#allocation9 + $0x320] sm:$0xff]  ;;  %v1022_v15 = vld [vmem:[#allocation9 + $0x330] sm:$0xff] }
 0x1c3   :  { %1807 = vmatprep.subr.bf16.mxu1 %v1806_v57  ;;  %v1918_v57 = vpack.c.bf16 %v987_v34, %v985_v22  ;;  %v990_v22 = vld [vmem:[#allocation9 + $0x230] sm:$0xff]  ;;  %v993_v34 = vld [vmem:[#allocation9 + $0x248] sm:$0xff] }
 0x1c5   :  { %1919 = vmatprep.subr.bf16.mxu0 %v1918_v57  ;;  %v1924_v57 = vpack.c.bf16 %v990_v22, %v988_v21  ;;  %v1031_v21 = vld [vmem:[#allocation9 + $0x378] sm:$0xff] }
 0x1c6   :  { %1809 = vmatpush1.bf16.msra.mxu1 %v1808_v29  ;;  %v568_v29 = vld [vmem:[#allocation6 + $0x6f8] sm:$0xff] }
 0x1c7   :  { %1811 = vmatprep.subr.bf16.mxu1 %v1810_v30  ;;  %v1832_v30 = vpack.c.bf16 %v559_v24, %v555_v23  ;;  %v1834_v32 = vpack.c.bf16 %v568_v29, %v564_v27  ;;  %v992_v23 = vld [vmem:[#allocation9 + $0x240] sm:$0xff]  ;;  %v994_v24 = vld [vmem:[#allocation9 + $0x250] sm:$0xff]  ;;  %v997_v27 = vld [vmem:[#allocation9 + $0x268] sm:$0xff] }
 0x1c8   :  { %v999_v29 = vld [vmem:[#allocation9 + $0x278] sm:$0xff] }
 0x1ca   :  { %1813 = vmatpush1.bf16.msra.mxu1 %v1812_v38  ;;  %v576_v38 = vld [vmem:[#allocation6 + $0x738] sm:$0xff] }
 0x1cb   :  { %1815 = vmatprep.subr.bf16.mxu1 %v1814_v41  ;;  %v1838_v40 = vpack.c.bf16 %v576_v38, %v572_v37  ;;  %v571_v41 = vld [vmem:[#allocation6 + $0x710] sm:$0xff]  ;;  %v1003_v38 = vld [vmem:[#allocation9 + $0x298] sm:$0xff] }
 0x1cc   :  { %v1840_v46 = vpack.c.bf16 %v575_v42, %v571_v41  ;;  %v1001_v37 = vld [vmem:[#allocation9 + $0x288] sm:$0xff]  ;;  %v1000_v41 = vld [vmem:[#allocation9 + $0x280] sm:$0xff]  ;;  %v1002_v42 = vld [vmem:[#allocation9 + $0x290] sm:$0xff] }
 0x1ce   :  { %1817 = vmatpush1.bf16.msra.mxu1 %v1816_v51  ;;  %v592_v51 = vld [vmem:[#allocation6 + $0x7b8] sm:$0xff] }
 0x1cf   :  { %1819 = vmatprep.subr.bf16.mxu1 %v1818_v55  ;;  %v1846_v54 = vpack.c.bf16 %v592_v51, %v588_v50  ;;  %v587_v55 = vld [vmem:[#allocation6 + $0x790] sm:$0xff]  ;;  %v1011_v51 = vld [vmem:[#allocation9 + $0x2d8] sm:$0xff] }
 0x1d0   :  { %v1848_v60 = vpack.c.bf16 %v591_v56, %v587_v55  ;;  %v1009_v50 = vld [vmem:[#allocation9 + $0x2c8] sm:$0xff]  ;;  %v1008_v55 = vld [vmem:[#allocation9 + $0x2c0] sm:$0xff]  ;;  %v1010_v56 = vld [vmem:[#allocation9 + $0x2d0] sm:$0xff] }
 0x1d2   :  { %1821 = vmatpush1.bf16.msra.mxu1 %v1820_v3  ;;  %v2512_v3 = vld [vmem:[#allocation7] sm:$0xf] }
 0x1d3   :  { %1823 = vmatprep.subr.bf16.mxu1 %v1822_v7  ;;  %v606_v6 = vrot.slane %v2512_v3, %v2478_v26  ;;  %v610_v8 = vrot.slane %v2512_v3, %v2481_v28 }
 0x1d6   :  { %1825 = vmatpush1.bf16.msra.mxu1 %v1824_v16 }
 0x1d7   :  { %1827 = vmatprep.subr.bf16.mxu1 %v1826_v17 }
 0x1da   :  { %1829 = vmatpush1.bf16.msra.mxu1 %v1828_v45  ;;  %v995_v45 = vld [vmem:[#allocation9 + $0x258] sm:$0xff] }
 0x1db   :  { %1831 = vmatprep.subr.bf16.mxu1 %v1830_v4  ;;  %v1926_v4 = vpack.c.bf16 %v995_v45, %v993_v34  ;;  %v1028_v45 = vld [vmem:[#allocation9 + $0x360] sm:$0xff] }
 0x1de   :  { %1833 = vmatpush1.bf16.msra.mxu1 %v1832_v30  ;;  %v1928_v30 = vpack.c.bf16 %v994_v24, %v992_v23  ;;  %v1035_v23 = vld [vmem:[#allocation9 + $0x398] sm:$0xff] }
 0x1df   :  { %1835 = vmatprep.subr.bf16.mxu1 %v1834_v32  ;;  %v1930_v32 = vpack.c.bf16 %v999_v29, %v997_v27  ;;  %v1032_v29 = vld [vmem:[#allocation9 + $0x380] sm:$0xff] }
 0x1e2   :  { %1837 = vmatpush1.bf16.msra.mxu1 %v1836_v39  ;;  %v1932_v39 = vpack.c.bf16 %v998_v36, %v996_v35  ;;  %v1039_v35 = vld [vmem:[#allocation9 + $0x3b8] sm:$0xff] }
 0x1e3   :  { %1839 = vmatprep.subr.bf16.mxu1 %v1838_v40  ;;  %v1934_v40 = vpack.c.bf16 %v1003_v38, %v1001_v37  ;;  %v1036_v38 = vld [vmem:[#allocation9 + $0x3a0] sm:$0xff] }
 0x1e6   :  { %1841 = vmatpush1.bf16.msra.mxu1 %v1840_v46  ;;  %v1936_v46 = vpack.c.bf16 %v1002_v42, %v1000_v41  ;;  %v1043_v41 = vld [vmem:[#allocation9 + $0x3d8] sm:$0xff] }
 0x1e7   :  { %1843 = vmatprep.subr.bf16.mxu1 %v1842_v47  ;;  %v1938_v47 = vpack.c.bf16 %v1007_v44, %v1005_v43  ;;  %v1040_v44 = vld [vmem:[#allocation9 + $0x3c0] sm:$0xff] }
 0x1ea   :  { %1845 = vmatpush1.bf16.msra.mxu1 %v1844_v53  ;;  %v1940_v53 = vpack.c.bf16 %v1006_v49, %v1004_v48  ;;  %v1047_v48 = vld [vmem:[#allocation9 + $0x3f8] sm:$0xff] }
 0x1eb   :  { %1847 = vmatprep.subr.bf16.mxu1 %v1846_v54  ;;  %v1942_v54 = vpack.c.bf16 %v1011_v51, %v1009_v50  ;;  %v1044_v51 = vld [vmem:[#allocation9 + $0x3e0] sm:$0xff] }
 0x1ee   :  { %1849 = vmatpush1.bf16.msra.mxu1 %v1848_v60  ;;  %v1944_v60 = vpack.c.bf16 %v1010_v56, %v1008_v55  ;;  %v915_v55 = vld [vmem:[%s2572_s8 + $0x18] sm:$0xff] }
 0x1ef   :  { %1851 = vmatprep.subr.bf16.mxu1 %v1850_v61  ;;  %v1946_v61 = vpack.c.bf16 %v1015_v59, %v1013_v58  ;;  %v614_v59 = vrot.slane %v2512_v3, %v172_v31  ;;  %v917_v31 = vld [vmem:[%s2572_s8 + $0x28] sm:$0xff] }
 0x1f2   :  { %1853 = vmatpush1.bf16.msra.mxu1 %v1852_v2  ;;  %v1017_v2 = vld [vmem:[#allocation9 + $0x308] sm:$0xff] }
 0x1f5   :  { %901 = vmatmul.mubr.f32.vlgmr.msra.gmra.mrb[6].mxu1 %v343_v63  ;;  %v991_v63 = vld [vmem:[#allocation9 + $0x238] sm:$0xff] }
 0x1f6   :  { %v1922_v20 = vpack.c.bf16 %v991_v63, %v989_v52  ;;  %v1027_v52 = vld [vmem:[#allocation9 + $0x358] sm:$0xff]  ;;  %v1956_v63 = vpack.c.bf16 %v1022_v15, %v1020_v14  ;;  %v1281_v15 = vld [vmem:[#allocation10] sm:$0xff]  ;;  %1587 = vmatprep.mubr.msk.f32.mxu1 %vm2277_vm3, %v2275_v0 }
 0x248   :  { %v689_v5 = vpop.f32.mrb[4].mxu1 }
 0x249   :  { %v691_v7 = vpop.f32.mrb[5].mxu1  ;;  %v690_v9 = vadd.f32 %v689_v5, %v606_v6  ;;  %v1019_v5 = vld [vmem:[#allocation9 + $0x318] sm:$0xff]  ;;  %v1948_v6 = vpack.c.bf16 %v1014_v1, %v1012_v62 }
 0x24a   :  { %v692_v10 = vadd.f32 %v691_v7, %v610_v8  ;;  %v1950_v7 = vpack.c.bf16 %v1019_v5, %v1017_v2  ;;  %v1016_v8 = vld [vmem:[#allocation9 + $0x300] sm:$0xff]  ;;  %v912_v2 = vld [vmem:[%s2572_s8] sm:$0xff]  ;;  %v914_v5 = vld [vmem:[%s2572_s8 + $0x10] sm:$0xff] }
 0x24e   :  { %v760_v11 = vpop.f32.mrb[0].mxu0 }
 0x24f   :  { %v761_v12 = vadd.f32 %v760_v11, %v690_v9  ;;  %v762_v13 = vpop.f32.mrb[1].mxu0  ;;  %v1018_v9 = vld [vmem:[#allocation9 + $0x310] sm:$0xff]  ;;  %v1023_v11 = vld [vmem:[#allocation9 + $0x338] sm:$0xff] }
 0x250   :  { %v763_v16 = vadd.f32 %v762_v13, %v692_v10  ;;  %v1021_v10 = vld [vmem:[#allocation9 + $0x328] sm:$0xff] }
 0x251   :  { %v907_v19 = vmax.f32 %v761_v12, 0.0  ;;  %v1952_v12 = vpack.c.bf16 %v1018_v9, %v1016_v8  ;;  %v1954_v13 = vpack.c.bf16 %v1023_v11, %v1021_v10  ;;  %v1986_v8 = vpack.c.bf16 %v919_v25, %v917_v31  ;;  %v916_v9 = vld [vmem:[%s2572_s8 + $0x20] sm:$0xff]  ;;  %v918_v10 = vld [vmem:[%s2572_s8 + $0x30] sm:$0xff]  ;;  %v1297_v11 = vld [vmem:[#allocation10 + $0x80] sm:$0xff] }
 0x252   :  { %v908_v17 = vmax.f32 %v763_v16, 0.0  ;;  %v1025_v16 = vld [vmem:[#allocation9 + $0x348] sm:$0xff]  ;;  %v2276_v31 = vmov 0.0|0.0  }
 0x253   :  { %2022 = vmatprep.subr.bf16.mxu1 %v2276_v31 }
 0x254   :  { %1112 = vmatprep.mubr.f32.mxu0 %v908_v17  ;;  %v1958_v17 = vpack.c.bf16 %v1027_v52, %v1025_v16  ;;  %v1282_v16 = vld [vmem:[#allocation10 + $0x8] sm:$0xff]  ;;  %v1299_v52 = vld [vmem:[#allocation10 + $0x90] sm:$0xff] }
 0x255   :  { %1113 = vmatmul.mubr.f32.vlgmr.msra.gmra.mrb[2].mxu0 %v907_v19  ;;  %v1026_v19 = vld [vmem:[#allocation9 + $0x350] sm:$0xff] }
 0x256   :  { %1921 = vmatpush1.bf16.msra.mxu0 %v1920_v18  ;;  %v1024_v18 = vld [vmem:[#allocation9 + $0x340] sm:$0xff] }
 0x257   :  { %1923 = vmatprep.subr.bf16.mxu0 %v1922_v20  ;;  %v1029_v20 = vld [vmem:[#allocation9 + $0x368] sm:$0xff]  ;;  %v1960_v22 = vpack.c.bf16 %v1026_v19, %v1024_v18  ;;  %v1992_v18 = vpack.c.bf16 %v1282_v16, %v1281_v15  ;;  %v1401_v16 = vld [vmem:[#allocation13 + $0x50] sm:$0xff] }
 0x258   :  { %v1962_v34 = vpack.c.bf16 %v1031_v21, %v1029_v20  ;;  %v1283_v20 = vld [vmem:[#allocation10 + $0x10] sm:$0xff]  ;;  %v1284_v21 = vld [vmem:[#allocation10 + $0x18] sm:$0xff] }
 0x25a   :  { %1925 = vmatpush1.bf16.msra.mxu0 %v1924_v57  ;;  %v1030_v57 = vld [vmem:[#allocation9 + $0x370] sm:$0xff] }
 0x25b   :  { %1927 = vmatprep.subr.bf16.mxu0 %v1926_v4  ;;  %v1033_v4 = vld [vmem:[#allocation9 + $0x388] sm:$0xff]  ;;  %v1964_v24 = vpack.c.bf16 %v1030_v57, %v1028_v45  ;;  %v1996_v45 = vpack.c.bf16 %v1284_v21, %v1283_v20 }
 0x25c   :  { %v1966_v27 = vpack.c.bf16 %v1035_v23, %v1033_v4  ;;  %v1285_v4 = vld [vmem:[#allocation10 + $0x20] sm:$0xff]  ;;  %v1286_v23 = vld [vmem:[#allocation10 + $0x28] sm:$0xff] }
 0x25e   :  { %1929 = vmatpush1.bf16.msra.mxu0 %v1928_v30  ;;  %v1034_v30 = vld [vmem:[#allocation9 + $0x390] sm:$0xff] }
 0x25f   :  { %1931 = vmatprep.subr.bf16.mxu0 %v1930_v32  ;;  %v1037_v32 = vld [vmem:[#allocation9 + $0x3a8] sm:$0xff]  ;;  %v1968_v36 = vpack.c.bf16 %v1034_v30, %v1032_v29  ;;  %v2000_v29 = vpack.c.bf16 %v1286_v23, %v1285_v4 }
 0x260   :  { %v1970_v37 = vpack.c.bf16 %v1039_v35, %v1037_v32  ;;  %v1287_v32 = vld [vmem:[#allocation10 + $0x30] sm:$0xff]  ;;  %v1288_v35 = vld [vmem:[#allocation10 + $0x38] sm:$0xff]  ;;  %v1403_v4 = vld [vmem:[#allocation13 + $0x60] sm:$0xff] }
 0x261   :  { %v1404_v23 = vld [vmem:[#allocation13 + $0x68] sm:$0xff] }
 0x262   :  { %1933 = vmatpush1.bf16.msra.mxu0 %v1932_v39  ;;  %v1038_v39 = vld [vmem:[#allocation9 + $0x3b0] sm:$0xff] }
 0x263   :  { %1935 = vmatprep.subr.bf16.mxu0 %v1934_v40  ;;  %v1041_v40 = vld [vmem:[#allocation9 + $0x3c8] sm:$0xff]  ;;  %v1972_v42 = vpack.c.bf16 %v1038_v39, %v1036_v38  ;;  %v2004_v38 = vpack.c.bf16 %v1288_v35, %v1287_v32 }
 0x264   :  { %v1974_v43 = vpack.c.bf16 %v1043_v41, %v1041_v40  ;;  %v1289_v40 = vld [vmem:[#allocation10 + $0x40] sm:$0xff]  ;;  %v1290_v41 = vld [vmem:[#allocation10 + $0x48] sm:$0xff] }
 0x266   :  { %1937 = vmatpush1.bf16.msra.mxu0 %v1936_v46  ;;  %v1042_v46 = vld [vmem:[#allocation9 + $0x3d0] sm:$0xff] }
 0x267   :  { %1939 = vmatprep.subr.bf16.mxu0 %v1938_v47  ;;  %v1045_v47 = vld [vmem:[#allocation9 + $0x3e8] sm:$0xff]  ;;  %v1976_v49 = vpack.c.bf16 %v1042_v46, %v1040_v44  ;;  %v2008_v44 = vpack.c.bf16 %v1290_v41, %v1289_v40 }
 0x268   :  { %v1978_v50 = vpack.c.bf16 %v1047_v48, %v1045_v47  ;;  %v1291_v47 = vld [vmem:[#allocation10 + $0x50] sm:$0xff]  ;;  %v1292_v48 = vld [vmem:[#allocation10 + $0x58] sm:$0xff] }
 0x26a   :  { %1941 = vmatpush1.bf16.msra.mxu0 %v1940_v53  ;;  %v1046_v53 = vld [vmem:[#allocation9 + $0x3f0] sm:$0xff] }
 0x26b   :  { %1943 = vmatprep.subr.bf16.mxu0 %v1942_v54  ;;  %v913_v54 = vld [vmem:[%s2572_s8 + $0x8] sm:$0xff]  ;;  %v1980_v56 = vpack.c.bf16 %v1046_v53, %v1044_v51  ;;  %v2012_v51 = vpack.c.bf16 %v1292_v48, %v1291_v47 }
 0x26c   :  { %v1982_v58 = vpack.c.bf16 %v915_v55, %v913_v54  ;;  %v1293_v54 = vld [vmem:[#allocation10 + $0x60] sm:$0xff]  ;;  %v1294_v55 = vld [vmem:[#allocation10 + $0x68] sm:$0xff] }
 0x26e   :  { %1945 = vmatpush1.bf16.msra.mxu0 %v1944_v60  ;;  %v618_v60 = vrot.slane %v2512_v3, %v176_v33  ;;  %v1984_v3 = vpack.c.bf16 %v914_v5, %v912_v2  ;;  %v1391_v2 = vld [vmem:[#allocation13] sm:$0xff]  ;;  %v1392_v5 = vld [vmem:[#allocation13 + $0x8] sm:$0xff] }
 0x26f   :  { %1947 = vmatprep.subr.bf16.mxu0 %v1946_v61  ;;  %v2023_v25 = vpack.c.bf16 %v1392_v5, %v1391_v2 }
 0x271   :  { %2024 = vmatpush3.bf16.msra.mxu1 %v2023_v25 }
 0x272   :  { %1949 = vmatpush1.bf16.msra.mxu0 %v1948_v6  ;;  %2025 = vmatprep.subr.bf16.mxu1 %v2276_v31 }
 0x273   :  { %1951 = vmatprep.subr.bf16.mxu0 %v1950_v7 }
 0x276   :  { %1953 = vmatpush1.bf16.msra.mxu0 %v1952_v12  ;;  %v1298_v12 = vld [vmem:[#allocation10 + $0x88] sm:$0xff] }
 0x277   :  { %1955 = vmatprep.subr.bf16.mxu0 %v1954_v13  ;;  %v1988_v13 = vpack.c.bf16 %v918_v10, %v916_v9  ;;  %v1990_v14 = vpack.c.bf16 %v1298_v12, %v1297_v11  ;;  %v1397_v10 = vld [vmem:[#allocation13 + $0x30] sm:$0xff]  ;;  %v1398_v11 = vld [vmem:[#allocation13 + $0x38] sm:$0xff] }
 0x278   :  { %v2032_v12 = vpack.c.bf16 %v1398_v11, %v1397_v10 }
 0x27a   :  { %1957 = vmatpush1.bf16.msra.mxu0 %v1956_v63  ;;  %v1300_v63 = vld [vmem:[#allocation10 + $0x98] sm:$0xff] }
 0x27b   :  { %1959 = vmatprep.subr.bf16.mxu0 %v1958_v17  ;;  %v911_v17 = vld [vmem:[%s2565_s1] sm:$0xff]  ;;  %v1994_v19 = vpack.c.bf16 %v1300_v63, %v1299_v52 }
 0x27c   :  { %v1402_v52 = vld [vmem:[#allocation13 + $0x58] sm:$0xff] }
 0x27d   :  { %v2038_v63 = vpack.c.bf16 %v1402_v52, %v1401_v16 }
 0x27e   :  { %1961 = vmatpush1.bf16.msra.mxu0 %v1960_v22  ;;  %v1301_v22 = vld [vmem:[#allocation10 + $0xa0] sm:$0xff] }
 0x27f   :  { %1963 = vmatprep.subr.bf16.mxu0 %v1962_v34  ;;  %v1302_v34 = vld [vmem:[#allocation10 + $0xa8] sm:$0xff] }
 0x280   :  { %v1998_v57 = vpack.c.bf16 %v1302_v34, %v1301_v22 }
 0x282   :  { %1965 = vmatpush1.bf16.msra.mxu0 %v1964_v24  ;;  %v1303_v24 = vld [vmem:[#allocation10 + $0xb0] sm:$0xff] }
 0x283   :  { %1967 = vmatprep.subr.bf16.mxu0 %v1966_v27  ;;  %v1304_v27 = vld [vmem:[#allocation10 + $0xb8] sm:$0xff] }
 0x284   :  { %v2002_v30 = vpack.c.bf16 %v1304_v27, %v1303_v24  ;;  %v2041_v24 = vpack.c.bf16 %v1404_v23, %v1403_v4  ;;  %v1405_v27 = vld [vmem:[#allocation13 + $0x70] sm:$0xff] }
 0x286   :  { %1969 = vmatpush1.bf16.msra.mxu0 %v1968_v36  ;;  %v1305_v36 = vld [vmem:[#allocation10 + $0xc0] sm:$0xff] }
 0x287   :  { %1971 = vmatprep.subr.bf16.mxu0 %v1970_v37  ;;  %v1306_v37 = vld [vmem:[#allocation10 + $0xc8] sm:$0xff] }
 0x288   :  { %v2006_v39 = vpack.c.bf16 %v1306_v37, %v1305_v36 }
 0x28a   :  { %1973 = vmatpush1.bf16.msra.mxu0 %v1972_v42  ;;  %v1307_v42 = vld [vmem:[#allocation10 + $0xd0] sm:$0xff] }
 0x28b   :  { %1975 = vmatprep.subr.bf16.mxu0 %v1974_v43  ;;  %v1308_v43 = vld [vmem:[#allocation10 + $0xd8] sm:$0xff] }
 0x28c   :  { %v2010_v46 = vpack.c.bf16 %v1308_v43, %v1307_v42 }
 0x28e   :  { %1977 = vmatpush1.bf16.msra.mxu0 %v1976_v49  ;;  %v1309_v49 = vld [vmem:[#allocation10 + $0xe0] sm:$0xff] }
 0x28f   :  { %1979 = vmatprep.subr.bf16.mxu0 %v1978_v50  ;;  %v1310_v50 = vld [vmem:[#allocation10 + $0xe8] sm:$0xff] }
 0x290   :  { %v2014_v53 = vpack.c.bf16 %v1310_v50, %v1309_v49 }
 0x292   :  { %1981 = vmatpush1.bf16.msra.mxu0 %v1980_v56  ;;  %v2016_v56 = vpack.c.bf16 %v1294_v55, %v1293_v54 }
 0x293   :  { %1983 = vmatprep.subr.bf16.mxu0 %v1982_v58  ;;  %v1311_v58 = vld [vmem:[#allocation10 + $0xf0] sm:$0xff] }
 0x2c8   :  { %v902_v61 = vpop.f32.mrb[6].mxu1 }
 0x2c9   :  { %v2050_v62 = vadd.f32 %v902_v61, %v614_v59  ;;  %v904_v1 = vpop.f32.mrb[7].mxu1  ;;  %v1312_v59 = vld [vmem:[#allocation10 + $0xf8] sm:$0xff]  ;;  %v1295_v61 = vld [vmem:[#allocation10 + $0x70] sm:$0xff] }
 0x2ca   :  { %v2051_v6 = vadd.f32 %v904_v1, %v618_v60  ;;  %v2018_v60 = vpack.c.bf16 %v1312_v59, %v1311_v58 }
 0x2cb   :  { %v909_v7 = vmax.f32 %v2050_v62, 0.0  ;;  %v1296_v62 = vld [vmem:[#allocation10 + $0x78] sm:$0xff] }
 0x2cc   :  { %v910_v33 = vmax.f32 %v2051_v6, 0.0  ;;  %v2020_v1 = vpack.c.bf16 %v1296_v62, %v1295_v61  ;;  %v1393_v6 = vld [vmem:[#allocation13 + $0x10] sm:$0xff] }
 0x2ce   :  { %1183 = vmatprep.mubr.f32.mxu0 %v910_v33  ;;  %v1394_v33 = vld [vmem:[#allocation13 + $0x18] sm:$0xff] }
 0x2cf   :  { %1184 = vmatmul.mubr.f32.vlgmr.msra.gmra.mrb[2].mxu0 %v909_v7  ;;  %v1395_v7 = vld [vmem:[#allocation13 + $0x20] sm:$0xff] }
 0x2d0   :  { %1985 = vmatpush1.bf16.msra.mxu0 %v1984_v3  ;;  %1258 = vmatprep.mubr.f32.mxu0 %v2275_v0  ;;  %v2026_v3 = vpack.c.bf16 %v1394_v33, %v1393_v6 }
 0x2d1   :  { %1987 = vmatprep.subr.bf16.mxu0 %v1986_v8  ;;  %v1396_v8 = vld [vmem:[#allocation13 + $0x28] sm:$0xff] }
 0x2d2   :  { %2027 = vmatpush3.bf16.msra.mxu1 %v2026_v3  ;;  %v2029_v9 = vpack.c.bf16 %v1396_v8, %v1395_v7 }
 0x2d3   :  { %2028 = vmatprep.subr.bf16.mxu1 %v2276_v31 }
 0x2d4   :  { %1989 = vmatpush1.bf16.msra.mxu0 %v1988_v13  ;;  %v1399_v13 = vld [vmem:[#allocation13 + $0x40] sm:$0xff] }
 0x2d5   :  { %1991 = vmatprep.subr.bf16.mxu0 %v1990_v14  ;;  %v1400_v14 = vld [vmem:[#allocation13 + $0x48] sm:$0xff] }
 0x2d6   :  { %2030 = vmatpush3.bf16.msra.mxu1 %v2029_v9  ;;  %v2035_v15 = vpack.c.bf16 %v1400_v14, %v1399_v13 }
 0x2d7   :  { %1500 = vmatmul.mubr.msk.f32.vlgmr.msra.gmra.mrb[2].mxu0 %vm1190_vm2, %v911_v17  ;;  %2031 = vmatprep.subr.bf16.mxu1 %v2276_v31  ;;  %v1265_v17 = vld [vmem:[%s2571_s7] sm:$0x3] }
 0x2d8   :  { %1993 = vmatpush3.bf16.msra.mxu0 %v1992_v18  ;;  %v1270_v18 = vrot.slane %v1265_v17, %v2478_v26 }
 0x2d9   :  { %1995 = vmatprep.subr.bf16.mxu0 %v1994_v19  ;;  %v1274_v19 = vrot.slane %v1265_v17, %v2481_v28  ;;  %v1501_v28 = vld [vmem:[#allocation12] ss:$0 sm:$0xff] }
 0x2da   :  { %2033 = vmatpush3.bf16.msra.mxu1 %v2032_v12 }
 0x2db   :  { %2034 = vmatprep.subr.bf16.mxu1 %v2276_v31 }
 0x2dc   :  { %1997 = vmatpush3.bf16.msra.mxu0 %v1996_v45 }
 0x2dd   :  { %1999 = vmatprep.subr.bf16.mxu0 %v1998_v57 }
 0x2de   :  { %2036 = vmatpush3.bf16.msra.mxu1 %v2035_v15 }
 0x2df   :  { %2037 = vmatprep.subr.bf16.mxu1 %v2276_v31 }
 0x2e0   :  { %2001 = vmatpush3.bf16.msra.mxu0 %v2000_v29  ;;  %v1406_v29 = vld [vmem:[#allocation13 + $0x78] sm:$0xff] }
 0x2e1   :  { %2003 = vmatprep.subr.bf16.mxu0 %v2002_v30  ;;  %v2044_v30 = vpack.c.bf16 %v1406_v29, %v1405_v27 }
 0x2e2   :  { %2039 = vmatpush3.bf16.msra.mxu1 %v2038_v63 }
 0x2e3   :  { %2040 = vmatprep.subr.bf16.mxu1 %v2276_v31 }
 0x2e4   :  { %2005 = vmatpush3.bf16.msra.mxu0 %v2004_v38  ;;  %v1502_v38 = vld [vmem:[%s2576_s12] ss:$0 sm:$0xff] }
 0x2e5   :  { %2007 = vmatprep.subr.bf16.mxu0 %v2006_v39 }
 0x2e6   :  { %2042 = vmatpush3.bf16.msra.mxu1 %v2041_v24 }
 0x2e7   :  { %2043 = vmatprep.subr.bf16.mxu1 %v2276_v31 }
 0x2e8   :  { %2009 = vmatpush3.bf16.msra.mxu0 %v2008_v44 }
 0x2e9   :  { %2011 = vmatprep.subr.bf16.mxu0 %v2010_v46 }
 0x2ea   :  { %2045 = vmatpush3.bf16.msra.mxu1 %v2044_v30 }
 0x2ec   :  { %2013 = vmatpush3.bf16.msra.mxu0 %v2012_v51 }
 0x2ed   :  { %2015 = vmatprep.subr.bf16.mxu0 %v2014_v53 }
 0x2f0   :  { %2017 = vmatpush3.bf16.msra.mxu0 %v2016_v56 }
 0x2f1   :  { %2019 = vmatprep.subr.bf16.mxu0 %v2018_v60 }
 0x2f4   :  { %2021 = vmatpush3.bf16.msra.mxu0 %v2020_v1 }
 0x3aa   :  { %v1260_v20 = vpop.f32.mrb[2].mxu0 }
 0x3ab   :  { %v1277_v21 = vadd.f32 %v1270_v18, %v1260_v20  ;;  %v1262_v22 = vpop.f32.mrb[3].mxu0 }
 0x3ac   :  { %v1278_v34 = vadd.f32 %v1274_v19, %v1262_v22 }
 0x3ad   :  { %v1279_v57 = vmax.f32 %v1277_v21, 0.0 }
 0x3ae   :  { %v1280_v45 = vmax.f32 %v1278_v34, 0.0 }
 0x3b0   :  { %1384 = vmatprep.mubr.f32.mxu0 %v1280_v45 }
 0x3b1   :  { %1385 = vmatmul.mubr.f32.vlgmr.msra.gmra.mrb[4].mxu0 %v1279_v57 }
 0x484   :  { %v1535_v26 = vpop.f32.mrb[4].mxu0 }
 0x485   :  { %v1536_v32 = vpop.f32.mrb[5].mxu0 }
 0x486   :  { %v1537_v35 = vadd.f32 %v1536_v32, %v1535_v26 }
 0x488   :  { %v1387_v36 = vadd.f32 %v1537_v35, %v1501_v28 }
 0x48a   :  { %v1390_v37 = vmax.f32 %v1387_v36, 0.0 }
 0x48c   :  { %1588 = vmatmul.mubr.f32.vlgmr.msra.gmra.mrb[8].mxu1 %v1390_v37 }
 0x55f   :  { %v1480_v39 = vpop.f32.mrb[8].mxu1 }
 0x560   :  { %v1481_v40 = vadd.f32 %v1502_v38, %v1480_v39  ;;  %v1589_v41 = vpop.f32.mrb[9].mxu1 }
 0x562   :  { %1484 = vst [vmem:[%s2577_s13] sm:$0xff] %v1481_v40 }
 0x563   :  { %1489 = vsyncpa [#allocation3], 1 }
 0x564   :  { %1490 = vsyncpa [#allocation5], 1 }
 0x565   :  { %1491 = vsyncpa [#allocation8], 1 }
 0x566   :  { %1492 = vsyncpa [#allocation11], 1 }
 0x567   :  { %1493 = vsyncpa [#allocation14], 1 }

</bundles_post_ra>
